<compile_context>
chip_gen: v7x
topology: tpu7x:2x2x1
jax: 0.10.0
libtpu: 0.0.40
codegen_flags: <defaults>
</compile_context>

<pallas_src>
import functools

import jax
import jax.numpy as jnp
from jax import lax
from jax.experimental import pallas as pl
from jax.experimental.pallas import tpu as pltpu


# ----------------------------------------------------------------------------- #
# Fused kernel: NCDE encoder (time loop in-kernel) + batched readout + BCE
# ----------------------------------------------------------------------------- #
def _fused_kernel(x_ref, y_ref, mask_ref,
                  w_init_ref, b_init_ref, wf_ref, bf_ref, wf_out_ref,
                  bf_out_ref, wm_ref, bm_ref, wm_out_ref, bm_out_ref,
                  rep_ref, sel_ref,
                  logits_ref, loss_ref,
                  embed_scr,
                  *, num_layer, x_dim, hidden, y_dim, n_sub, bound):
    T, bp, _ = x_ref.shape

    # Hoist all weight / constant reads: a single VMEM load each, reused across
    # every time step and Euler sub-step below.
    w_init = w_init_ref[...]
    b_init = b_init_ref[...]
    wfs = [wf_ref[l] for l in range(num_layer)]
    bfs = [bf_ref[l] for l in range(num_layer)]
    wf_out = wf_out_ref[...]
    bf_out = bf_out_ref[...]
    wms = [wm_ref[l] for l in range(num_layer)]
    bms = [bm_ref[l] for l in range(num_layer)]
    wm_out = wm_out_ref[...]
    bm_out = bm_out_ref[...]
    rep = rep_ref[...]          # (x_dim, x_dim*hidden) 0/(1/n_sub) replication matrix
    sel = sel_ref[...]          # (x_dim*hidden, hidden) stacked-identity selection

    # ------------------- NCDE encoder: h0 + Euler recurrence ------------------ #
    x0 = x_ref[0]
    h0 = jnp.tanh(jnp.dot(x0, w_init, preferred_element_type=jnp.float32) + b_init)
    embed_scr[pl.ds(0, bp), :] = h0

    def vector_field(h):
        z = h
        for l in range(num_layer):                    # static unroll
            z = jnp.tanh(jnp.dot(z, wfs[l],
                                 preferred_element_type=jnp.float32) + bfs[l])
        return jnp.tanh(jnp.dot(z, wf_out,
                                preferred_element_type=jnp.float32) + bf_out)

    def time_step(k, carry):
        h, x_prev = carry
        x_k = x_ref[k]
        # Lane-replicated control increment in ONE MXU op (1/n_sub folded into
        # `rep`): keeps cross-lane broadcasts off the serial Euler path.
        dx_rep = jnp.dot(x_k - x_prev, rep, preferred_element_type=jnp.float32)

        def euler_sub(_, h_in):
            z = vector_field(h_in)                    # (bp, x_dim*hidden)
            zdx = z * dx_rep                          # single full-lane vmul
            # Contraction over the x_dim lane-blocks as ONE MXU matmul
            # (no sub-vreg lane slicing on the recurrence critical path).
            dh = jnp.dot(zdx, sel, preferred_element_type=jnp.float32)
            return h_in + dh

        h = lax.fori_loop(0, n_sub, euler_sub, h, unroll=True)
        start = pl.multiple_of(k * bp, bp)            # bp is a multiple of 8
        embed_scr[pl.ds(start, bp), :] = h
        return h, x_k

    lax.fori_loop(1, T, time_step, (h0, x0))

    # --------- Readout MLP + clamp over the whole (T*bp, hidden) slab --------- #
    z = embed_scr[...]
    for l in range(num_layer):
        z = jnp.maximum(
            jnp.dot(z, wms[l], preferred_element_type=jnp.float32) + bms[l], 0.0)
    logits = jnp.dot(z, wm_out, preferred_element_type=jnp.float32) + bm_out
    logits = jnp.clip(logits, -bound, bound)          # clamp-before-BCE (matches ref)
    logits_ref[...] = logits.astype(logits_ref.dtype)

    # --------- Masked BCE-with-logits: one reduction over the full slab ------- #
    #   max(l,0) - l*y + log(1 + exp(-|l|)); padded batch rows have mask=0.
    y = y_ref[...]                                    # (T*bp, y_dim)
    m = (mask_ref[...] > 0.5).astype(jnp.float32)     # (T*bp, 1)
    elem = (jnp.maximum(logits, 0.0) - logits * y
            + jnp.log1p(jnp.exp(-jnp.abs(logits))))
    lsum = jnp.sum(elem * m)
    lcnt = jnp.sum(m) * float(y_dim)
    loss_ref[...] = jnp.reshape(lsum / jnp.maximum(lcnt, 1.0), (1, 1))


# ----------------------------------------------------------------------------- #
# pallas_call wrapper
# ----------------------------------------------------------------------------- #
def _full_spec(shape):
    nd = len(shape)
    return pl.BlockSpec(tuple(shape), lambda i, nd=nd: (0,) * nd)


def _cost_estimate(T, bp, x_dim, y_dim, hidden, num_layer, n_sub, n_params):
    xh = x_dim * hidden
    per_sub = (num_layer * 2 * bp * hidden * hidden     # vector-field hidden layers
               + 2 * bp * hidden * xh                   # vf output layer
               + 2 * bp * xh * hidden)                  # zdx @ sel contraction
    enc = (2 * bp * x_dim * hidden
           + (T - 1) * (2 * bp * x_dim * xh + n_sub * per_sub))
    ro = (num_layer * 2 * (T * bp) * hidden * hidden
          + 2 * (T * bp) * hidden * y_dim)
    transc = (bp * hidden
              + (T - 1) * n_sub * (num_layer * bp * hidden + bp * xh)
              + 2 * T * bp * y_dim)
    io = 4 * (T * bp * (x_dim + 2 * y_dim + 1) + 1 + n_params)
    return pl.CostEstimate(flops=int(enc + ro), transcendentals=int(transc),
                           bytes_accessed=int(io))


def fused_predictor_call(params, x_tm, y_flat, m_flat, rep, sel, *, x_dim, y_dim,
                         hidden, num_layer, n_sub, bound):
    T, bp, _ = x_tm.shape
    kernel = functools.partial(_fused_kernel, num_layer=num_layer, x_dim=x_dim,
                               hidden=hidden, y_dim=y_dim, n_sub=n_sub,
                               bound=bound)
    weight_order = ("w_init", "b_init", "wf", "bf", "wf_out", "bf_out",
                    "wm", "bm", "wm_out", "bm_out")
    weights = [params[n] for n in weight_order]
    n_params = sum(int(w.size) for w in weights) + int(rep.size) + int(sel.size)
    inputs = (x_tm, y_flat, m_flat, *weights, rep, sel)

    return pl.pallas_call(
        kernel,
        out_shape=(jax.ShapeDtypeStruct((T * bp, y_dim), jnp.float32),
                   jax.ShapeDtypeStruct((1, 1), jnp.float32)),
        grid_spec=pltpu.PrefetchScalarGridSpec(
            num_scalar_prefetch=0,
            grid=(1,),                                 # single step; time loops in-kernel
            in_specs=[_full_spec(a.shape) for a in inputs],
            out_specs=(_full_spec((T * bp, y_dim)),
                       _full_spec((1, 1))),
            scratch_shapes=[pltpu.VMEM((T * bp, hidden), jnp.float32)]),  # embed slab
        compiler_params=pltpu.CompilerParams(
            dimension_semantics=("arbitrary",),
            vmem_limit_bytes=32 * 1024 * 1024),        # safe on v5e/v6e/v7x (64 MiB phys)
        cost_estimate=_cost_estimate(T, bp, x_dim, y_dim, hidden, num_layer,
                                     n_sub, n_params),
    )(*inputs)


# ----------------------------------------------------------------------------- #
# Predictor wrapper (forward pass)
# ----------------------------------------------------------------------------- #
def init_params(key, *, x_dim, y_dim, hidden, num_layer):
    ks = jax.random.split(key, 5)
    s = 0.3
    inv_sqrt_h = 1.0 / jnp.sqrt(float(hidden))
    params = dict(
        # NCDE encoder
        w_init=jax.random.normal(ks[0], (x_dim, hidden)) * s,
        b_init=jnp.zeros((1, hidden)),
        wf=jax.random.normal(ks[1], (num_layer, hidden, hidden)) * (s * inv_sqrt_h),
        bf=jnp.zeros((num_layer, 1, hidden)),
        wf_out=jax.random.normal(ks[2], (hidden, x_dim * hidden)) * (s * inv_sqrt_h),
        bf_out=jnp.zeros((1, x_dim * hidden)),
        # readout MLP
        wm=jax.random.normal(ks[3], (num_layer, hidden, hidden)) * inv_sqrt_h,
        bm=jnp.zeros((num_layer, 1, hidden)),
        wm_out=jax.random.normal(ks[4], (hidden, y_dim)) * inv_sqrt_h,
        bm_out=jnp.zeros((1, y_dim)),
    )
    return jax.tree.map(lambda a: a.astype(jnp.float32), params)


def predictor_forward(params, batch, *, x_dim, y_dim, hidden, num_layer,
                      n_sub, bound=5.0):
    """Mirrors Predictor.forward (fit_obs=False): returns ({'bce': loss}, logits)."""
    x, y, mask = batch["x"], batch["y"], batch["mask"]
    B, T, _ = x.shape
    bp = ((B + 7) // 8) * 8                            # pad batch to 8-sublane width

    def to_tm(a):                                      # (B, T, F) -> (T, Bp, F)
        a = jnp.transpose(a, (1, 0, 2)).astype(jnp.float32)
        return jnp.pad(a, ((0, 0), (0, bp - B), (0, 0)))

    x_tm = to_tm(x)                                    # (T, bp, x_dim)
    y_flat = to_tm(y).reshape(T * bp, y_dim)
    m_flat = to_tm(mask[:, :, None]).reshape(T * bp, 1)  # padded rows get mask=0

    # Constant replication / selection matrices for the MXU-friendly dX math.
    rep = (jnp.kron(jnp.eye(x_dim, dtype=jnp.float32),
                    jnp.ones((1, hidden), jnp.float32)) / float(n_sub))
    sel = jnp.tile(jnp.eye(hidden, dtype=jnp.float32), (x_dim, 1))

    logits_flat, loss = fused_predictor_call(params, x_tm, y_flat, m_flat, rep, sel,
                                             x_dim=x_dim, y_dim=y_dim,
                                             hidden=hidden, num_layer=num_layer,
                                             n_sub=n_sub, bound=bound)
    logits = jnp.transpose(logits_flat.reshape(T, bp, y_dim)[:, :B, :], (1, 0, 2))
    return {"bce": loss[0, 0]}, logits


# ----------------------------------------------------------------------------- #
# Pure-JAX reference (sanity check)
# ----------------------------------------------------------------------------- #
def _reference_forward(params, batch, *, x_dim, y_dim, hidden, num_layer,
                       n_sub, bound=5.0):
    x = batch["x"].astype(jnp.float32)
    y = batch["y"].astype(jnp.float32)
    mask = batch["mask"].astype(jnp.float32)
    B, T, _ = x.shape

    h = jnp.tanh(x[:, 0, :] @ params["w_init"] + params["b_init"])
    embeds = [h]
    for k in range(T - 1):
        dx = (x[:, k + 1, :] - x[:, k, :]) / n_sub
        for _ in range(n_sub):
            z = h
            for l in range(num_layer):
                z = jnp.tanh(z @ params["wf"][l] + params["bf"][l])
            z = jnp.tanh(z @ params["wf_out"] + params["bf_out"])
            dh = jnp.zeros_like(h)
            for j in range(x_dim):
                dh = dh + z[:, j * hidden:(j + 1) * hidden] * dx[:, j:j + 1]
            h = h + dh
        embeds.append(h)
    embed = jnp.stack(embeds, axis=1)                  # (B, T, H)

    z = embed
    for l in range(num_layer):
        z = jnp.maximum(z @ params["wm"][l] + params["bm"][l], 0.0)
    logits = jnp.clip(z @ params["wm_out"] + params["bm_out"], -bound, bound)

    m = (mask > 0.5).astype(jnp.float32)[:, :, None]
    elem = jnp.maximum(logits, 0.0) - logits * y + jnp.log1p(jnp.exp(-jnp.abs(logits)))
    loss = jnp.sum(elem * m) / jnp.maximum(jnp.sum(m) * y_dim, 1.0)
    return loss, logits


# ----------------------------------------------------------------------------- #
# Main
# ----------------------------------------------------------------------------- #
if __name__ == "__main__":
    x_dim, y_dim = 4, 2
    hidden, num_layer = 32, 2
    B, T = 2, 8
    resolution = 0.3
    dt = 0.6
    n_sub = max(1, int(round(dt / resolution)))        # Euler sub-steps / interval

    key = jax.random.PRNGKey(0)
    k_param, k_x, k_y, k_m = jax.random.split(key, 4)

    params = init_params(k_param, x_dim=x_dim, y_dim=y_dim,
                         hidden=hidden, num_layer=num_layer)

    t = jnp.broadcast_to(jnp.arange(T, dtype=jnp.float32) * dt, (B, T))
    x = jax.random.normal(k_x, (B, T, x_dim), dtype=jnp.float32)
    y = jax.random.bernoulli(k_y, 0.5, (B, T, y_dim)).astype(jnp.float32)
    mask = jax.random.bernoulli(k_m, 0.7, (B, T)).astype(jnp.float32)
    mask = mask.at[:, 0].set(1.0)                      # ensure nonempty mask

    batch = {"t": t, "x": x, "y": y, "mask": mask}

    losses, logits = predictor_forward(params, batch, x_dim=x_dim, y_dim=y_dim,
                                       hidden=hidden, num_layer=num_layer,
                                       n_sub=n_sub)
    jax.block_until_ready(losses["bce"])
    jax.block_until_ready(logits)

    ref_loss, ref_logits = _reference_forward(params, batch, x_dim=x_dim,
                                              y_dim=y_dim, hidden=hidden,
                                              num_layer=num_layer, n_sub=n_sub)
    assert jnp.allclose(losses["bce"], ref_loss, rtol=2e-2, atol=2e-2), (
        losses["bce"], ref_loss)
    assert jnp.allclose(logits, ref_logits, rtol=2e-2, atol=2e-2)

    print("KERNEL_OK")
</pallas_src>

<mosaic_0001>
module attributes {stable_mosaic.version = 11 : i64} {
  func.func @_fused_kernel(%arg0: i32, %arg1: memref<8x8x4xf32, #tpu.memory_space<vmem>>, %arg2: memref<64x2xf32, #tpu.memory_space<vmem>>, %arg3: memref<64x1xf32, #tpu.memory_space<vmem>>, %arg4: memref<4x32xf32, #tpu.memory_space<vmem>>, %arg5: memref<1x32xf32, #tpu.memory_space<vmem>>, %arg6: memref<2x32x32xf32, #tpu.memory_space<vmem>>, %arg7: memref<2x1x32xf32, #tpu.memory_space<vmem>>, %arg8: memref<32x128xf32, #tpu.memory_space<vmem>>, %arg9: memref<1x128xf32, #tpu.memory_space<vmem>>, %arg10: memref<2x32x32xf32, #tpu.memory_space<vmem>>, %arg11: memref<2x1x32xf32, #tpu.memory_space<vmem>>, %arg12: memref<32x2xf32, #tpu.memory_space<vmem>>, %arg13: memref<1x2xf32, #tpu.memory_space<vmem>>, %arg14: memref<4x128xf32, #tpu.memory_space<vmem>>, %arg15: memref<128x32xf32, #tpu.memory_space<vmem>>, %arg16: memref<64x2xf32, #tpu.memory_space<vmem>>, %arg17: memref<1x1xf32, #tpu.memory_space<vmem>>, %arg18: memref<64x32xf32, #tpu.memory_space<vmem>>) attributes {dimension_semantics = [#tpu.dimension_semantics<arbitrary>], iteration_bounds = array<i64: 1>, scalar_prefetch = 0 : i64, scratch_operands = 1 : i64, tpu.core_type = #tpu.core_type<tc>, window_params = [{pipeline_mode = #tpu.pipeline_mode<synchronous>, transform_indices = @transform_0, window_bounds = array<i64: 8, 8, 4>}, {pipeline_mode = #tpu.pipeline_mode<synchronous>, transform_indices = @transform_1, window_bounds = array<i64: 64, 2>}, {pipeline_mode = #tpu.pipeline_mode<synchronous>, transform_indices = @transform_2, window_bounds = array<i64: 64, 1>}, {pipeline_mode = #tpu.pipeline_mode<synchronous>, transform_indices = @transform_3, window_bounds = array<i64: 4, 32>}, {pipeline_mode = #tpu.pipeline_mode<synchronous>, transform_indices = @transform_4, window_bounds = array<i64: 1, 32>}, {pipeline_mode = #tpu.pipeline_mode<synchronous>, transform_indices = @transform_5, window_bounds = array<i64: 2, 32, 32>}, {pipeline_mode = #tpu.pipeline_mode<synchronous>, transform_indices = @transform_6, window_bounds = array<i64: 2, 1, 32>}, {pipeline_mode = #tpu.pipeline_mode<synchronous>, transform_indices = @transform_7, window_bounds = array<i64: 32, 128>}, {pipeline_mode = #tpu.pipeline_mode<synchronous>, transform_indices = @transform_8, window_bounds = array<i64: 1, 128>}, {pipeline_mode = #tpu.pipeline_mode<synchronous>, transform_indices = @transform_9, window_bounds = array<i64: 2, 32, 32>}, {pipeline_mode = #tpu.pipeline_mode<synchronous>, transform_indices = @transform_10, window_bounds = array<i64: 2, 1, 32>}, {pipeline_mode = #tpu.pipeline_mode<synchronous>, transform_indices = @transform_11, window_bounds = array<i64: 32, 2>}, {pipeline_mode = #tpu.pipeline_mode<synchronous>, transform_indices = @transform_12, window_bounds = array<i64: 1, 2>}, {pipeline_mode = #tpu.pipeline_mode<synchronous>, transform_indices = @transform_13, window_bounds = array<i64: 4, 128>}, {pipeline_mode = #tpu.pipeline_mode<synchronous>, transform_indices = @transform_14, window_bounds = array<i64: 128, 32>}, {pipeline_mode = #tpu.pipeline_mode<synchronous>, transform_indices = @transform_15, window_bounds = array<i64: 64, 2>}, {pipeline_mode = #tpu.pipeline_mode<synchronous>, transform_indices = @transform_16, window_bounds = array<i64: 1, 1>}]} {
    %c0 = arith.constant 0 : index
    %c0_0 = arith.constant 0 : index
    %0 = vector.load %arg4[%c0, %c0_0] : memref<4x32xf32, #tpu.memory_space<vmem>>, vector<4x32xf32>
    %c0_1 = arith.constant 0 : index
    %c0_2 = arith.constant 0 : index
    %1 = vector.load %arg5[%c0_1, %c0_2] : memref<1x32xf32, #tpu.memory_space<vmem>>, vector<1x32xf32>
    %c0_3 = arith.constant 0 : index
    %c0_4 = arith.constant 0 : index
    %c0_5 = arith.constant 0 : index
    %2 = vector.load %arg6[%c0_3, %c0_4, %c0_5] : memref<2x32x32xf32, #tpu.memory_space<vmem>>, vector<1x32x32xf32>
    %3 = vector.shape_cast %2 : vector<1x32x32xf32> to vector<32x32xf32>
    %c1 = arith.constant 1 : index
    %c0_6 = arith.constant 0 : index
    %c0_7 = arith.constant 0 : index
    %4 = vector.load %arg6[%c1, %c0_6, %c0_7] : memref<2x32x32xf32, #tpu.memory_space<vmem>>, vector<1x32x32xf32>
    %5 = vector.shape_cast %4 : vector<1x32x32xf32> to vector<32x32xf32>
    %c0_8 = arith.constant 0 : index
    %c0_9 = arith.constant 0 : index
    %c0_10 = arith.constant 0 : index
    %6 = vector.load %arg7[%c0_8, %c0_9, %c0_10] : memref<2x1x32xf32, #tpu.memory_space<vmem>>, vector<1x1x32xf32>
    %7 = vector.shape_cast %6 : vector<1x1x32xf32> to vector<1x32xf32>
    %c1_11 = arith.constant 1 : index
    %c0_12 = arith.constant 0 : index
    %c0_13 = arith.constant 0 : index
    %8 = vector.load %arg7[%c1_11, %c0_12, %c0_13] : memref<2x1x32xf32, #tpu.memory_space<vmem>>, vector<1x1x32xf32>
    %9 = vector.shape_cast %8 : vector<1x1x32xf32> to vector<1x32xf32>
    %c0_14 = arith.constant 0 : index
    %c0_15 = arith.constant 0 : index
    %10 = vector.load %arg8[%c0_14, %c0_15] : memref<32x128xf32, #tpu.memory_space<vmem>>, vector<32x128xf32>
    %c0_16 = arith.constant 0 : index
    %c0_17 = arith.constant 0 : index
    %11 = vector.load %arg9[%c0_16, %c0_17] : memref<1x128xf32, #tpu.memory_space<vmem>>, vector<1x128xf32>
    %c0_18 = arith.constant 0 : index
    %c0_19 = arith.constant 0 : index
    %c0_20 = arith.constant 0 : index
    %12 = vector.load %arg10[%c0_18, %c0_19, %c0_20] : memref<2x32x32xf32, #tpu.memory_space<vmem>>, vector<1x32x32xf32>
    %13 = vector.shape_cast %12 : vector<1x32x32xf32> to vector<32x32xf32>
    %c1_21 = arith.constant 1 : index
    %c0_22 = arith.constant 0 : index
    %c0_23 = arith.constant 0 : index
    %14 = vector.load %arg10[%c1_21, %c0_22, %c0_23] : memref<2x32x32xf32, #tpu.memory_space<vmem>>, vector<1x32x32xf32>
    %15 = vector.shape_cast %14 : vector<1x32x32xf32> to vector<32x32xf32>
    %c0_24 = arith.constant 0 : index
    %c0_25 = arith.constant 0 : index
    %c0_26 = arith.constant 0 : index
    %16 = vector.load %arg11[%c0_24, %c0_25, %c0_26] : memref<2x1x32xf32, #tpu.memory_space<vmem>>, vector<1x1x32xf32>
    %17 = vector.shape_cast %16 : vector<1x1x32xf32> to vector<1x32xf32>
    %c1_27 = arith.constant 1 : index
    %c0_28 = arith.constant 0 : index
    %c0_29 = arith.constant 0 : index
    %18 = vector.load %arg11[%c1_27, %c0_28, %c0_29] : memref<2x1x32xf32, #tpu.memory_space<vmem>>, vector<1x1x32xf32>
    %19 = vector.shape_cast %18 : vector<1x1x32xf32> to vector<1x32xf32>
    %c0_30 = arith.constant 0 : index
    %c0_31 = arith.constant 0 : index
    %20 = vector.load %arg12[%c0_30, %c0_31] : memref<32x2xf32, #tpu.memory_space<vmem>>, vector<32x2xf32>
    %c0_32 = arith.constant 0 : index
    %c0_33 = arith.constant 0 : index
    %21 = vector.load %arg13[%c0_32, %c0_33] : memref<1x2xf32, #tpu.memory_space<vmem>>, vector<1x2xf32>
    %c0_34 = arith.constant 0 : index
    %c0_35 = arith.constant 0 : index
    %22 = vector.load %arg14[%c0_34, %c0_35] : memref<4x128xf32, #tpu.memory_space<vmem>>, vector<4x128xf32>
    %c0_36 = arith.constant 0 : index
    %c0_37 = arith.constant 0 : index
    %23 = vector.load %arg15[%c0_36, %c0_37] : memref<128x32xf32, #tpu.memory_space<vmem>>, vector<128x32xf32>
    %c0_38 = arith.constant 0 : index
    %c0_39 = arith.constant 0 : index
    %c0_40 = arith.constant 0 : index
    %24 = vector.load %arg1[%c0_38, %c0_39, %c0_40] : memref<8x8x4xf32, #tpu.memory_space<vmem>>, vector<1x8x4xf32>
    %25 = vector.shape_cast %24 : vector<1x8x4xf32> to vector<8x4xf32>
    %cst = arith.constant dense<0.000000e+00> : vector<8x32xf32>
    %26 = tpu.matmul %25, %0, %cst {dimension_numbers = #tpu.dot_dimension_numbers<[1], [0], [0], [1], [0, 0, 1, 1], [], []>} : vector<8x4xf32>, vector<4x32xf32>, vector<8x32xf32> -> vector<8x32xf32>
    %27 = vector.broadcast %1 : vector<1x32xf32> to vector<8x32xf32>
    %28 = arith.addf %26, %27 : vector<8x32xf32>
    %29 = math.tanh %28 : vector<8x32xf32>
    %c0_41 = arith.constant 0 : index
    %c0_42 = arith.constant 0 : index
    %30 = vector.load %arg18[%c0_41, %c0_42] : memref<64x32xf32, #tpu.memory_space<vmem>>, vector<8x32xf32>
    tpu.vector_store %arg18[%c0_41, %c0_42], %29 {strides = array<i32>} : memref<64x32xf32, #tpu.memory_space<vmem>>, vector<8x32xf32>,
    %c1_i32 = arith.constant 1 : i32
    %c7_i32 = arith.constant 7 : i32
    %31 = arith.addi %c1_i32, %c7_i32 : i32
    %c1_i32_43 = arith.constant 1 : i32
    %32:2 = scf.for %arg19 = %c1_i32 to %31 step %c1_i32_43 iter_args(%arg20 = %29, %arg21 = %25) -> (vector<8x32xf32>, vector<8x4xf32>)  : i32 {
      %83 = arith.index_cast %arg19 : i32 to index
      %c0_69 = arith.constant 0 : index
      %c0_70 = arith.constant 0 : index
      %84 = vector.load %arg1[%83, %c0_69, %c0_70] : memref<8x8x4xf32, #tpu.memory_space<vmem>>, vector<1x8x4xf32>
      %85 = vector.shape_cast %84 : vector<1x8x4xf32> to vector<8x4xf32>
      %86 = arith.subf %85, %arg21 : vector<8x4xf32>
      %cst_71 = arith.constant dense<0.000000e+00> : vector<8x128xf32>
      %87 = tpu.matmul %86, %22, %cst_71 {dimension_numbers = #tpu.dot_dimension_numbers<[1], [0], [0], [1], [0, 0, 1, 1], [], []>} : vector<8x4xf32>, vector<4x128xf32>, vector<8x128xf32> -> vector<8x128xf32>
      %c0_i32 = arith.constant 0 : i32
      %cst_72 = arith.constant dense<0.000000e+00> : vector<8x32xf32>
      %88 = tpu.matmul %arg20, %3, %cst_72 {dimension_numbers = #tpu.dot_dimension_numbers<[1], [0], [0], [1], [0, 0, 1, 1], [], []>} : vector<8x32xf32>, vector<32x32xf32>, vector<8x32xf32> -> vector<8x32xf32>
      %89 = vector.broadcast %7 : vector<1x32xf32> to vector<8x32xf32>
      %90 = arith.addf %88, %89 : vector<8x32xf32>
      %91 = math.tanh %90 : vector<8x32xf32>
      %cst_73 = arith.constant dense<0.000000e+00> : vector<8x32xf32>
      %92 = tpu.matmul %91, %5, %cst_73 {dimension_numbers = #tpu.dot_dimension_numbers<[1], [0], [0], [1], [0, 0, 1, 1], [], []>} : vector<8x32xf32>, vector<32x32xf32>, vector<8x32xf32> -> vector<8x32xf32>
      %93 = vector.broadcast %9 : vector<1x32xf32> to vector<8x32xf32>
      %94 = arith.addf %92, %93 : vector<8x32xf32>
      %95 = math.tanh %94 : vector<8x32xf32>
      %cst_74 = arith.constant dense<0.000000e+00> : vector<8x128xf32>
      %96 = tpu.matmul %95, %10, %cst_74 {dimension_numbers = #tpu.dot_dimension_numbers<[1], [0], [0], [1], [0, 0, 1, 1], [], []>} : vector<8x32xf32>, vector<32x128xf32>, vector<8x128xf32> -> vector<8x128xf32>
      %97 = vector.broadcast %11 : vector<1x128xf32> to vector<8x128xf32>
      %98 = arith.addf %96, %97 : vector<8x128xf32>
      %99 = math.tanh %98 : vector<8x128xf32>
      %100 = arith.mulf %99, %87 : vector<8x128xf32>
      %cst_75 = arith.constant dense<0.000000e+00> : vector<8x32xf32>
      %101 = tpu.matmul %100, %23, %cst_75 {dimension_numbers = #tpu.dot_dimension_numbers<[1], [0], [0], [1], [0, 0, 1, 1], [], []>} : vector<8x128xf32>, vector<128x32xf32>, vector<8x32xf32> -> vector<8x32xf32>
      %102 = arith.addf %arg20, %101 : vector<8x32xf32>
      %c1_i32_76 = arith.constant 1 : i32
      %cst_77 = arith.constant dense<0.000000e+00> : vector<8x32xf32>
      %103 = tpu.matmul %102, %3, %cst_77 {dimension_numbers = #tpu.dot_dimension_numbers<[1], [0], [0], [1], [0, 0, 1, 1], [], []>} : vector<8x32xf32>, vector<32x32xf32>, vector<8x32xf32> -> vector<8x32xf32>
      %104 = vector.broadcast %7 : vector<1x32xf32> to vector<8x32xf32>
      %105 = arith.addf %103, %104 : vector<8x32xf32>
      %106 = math.tanh %105 : vector<8x32xf32>
      %cst_78 = arith.constant dense<0.000000e+00> : vector<8x32xf32>
      %107 = tpu.matmul %106, %5, %cst_78 {dimension_numbers = #tpu.dot_dimension_numbers<[1], [0], [0], [1], [0, 0, 1, 1], [], []>} : vector<8x32xf32>, vector<32x32xf32>, vector<8x32xf32> -> vector<8x32xf32>
      %108 = vector.broadcast %9 : vector<1x32xf32> to vector<8x32xf32>
      %109 = arith.addf %107, %108 : vector<8x32xf32>
      %110 = math.tanh %109 : vector<8x32xf32>
      %cst_79 = arith.constant dense<0.000000e+00> : vector<8x128xf32>
      %111 = tpu.matmul %110, %10, %cst_79 {dimension_numbers = #tpu.dot_dimension_numbers<[1], [0], [0], [1], [0, 0, 1, 1], [], []>} : vector<8x32xf32>, vector<32x128xf32>, vector<8x128xf32> -> vector<8x128xf32>
      %112 = vector.broadcast %11 : vector<1x128xf32> to vector<8x128xf32>
      %113 = arith.addf %111, %112 : vector<8x128xf32>
      %114 = math.tanh %113 : vector<8x128xf32>
      %115 = arith.mulf %114, %87 : vector<8x128xf32>
      %cst_80 = arith.constant dense<0.000000e+00> : vector<8x32xf32>
      %116 = tpu.matmul %115, %23, %cst_80 {dimension_numbers = #tpu.dot_dimension_numbers<[1], [0], [0], [1], [0, 0, 1, 1], [], []>} : vector<8x128xf32>, vector<128x32xf32>, vector<8x32xf32> -> vector<8x32xf32>
      %117 = arith.addf %102, %116 : vector<8x32xf32>
      %c8_i32 = arith.constant 8 : i32
      %118 = arith.muli %arg19, %c8_i32 : i32
      %119 = tpu.assume_multiple %118, 8 : i32
      %120 = arith.index_cast %119 : i32 to index
      %c0_81 = arith.constant 0 : index
      %121 = vector.load %arg18[%120, %c0_81] : memref<64x32xf32, #tpu.memory_space<vmem>>, vector<8x32xf32>
      tpu.vector_store %arg18[%120, %c0_81], %117 {strides = array<i32>} : memref<64x32xf32, #tpu.memory_space<vmem>>, vector<8x32xf32>,
      scf.yield %117, %85 : vector<8x32xf32>, vector<8x4xf32>
    }
    %c7_i32_44 = arith.constant 7 : i32
    %c0_45 = arith.constant 0 : index
    %c0_46 = arith.constant 0 : index
    %33 = vector.load %arg18[%c0_45, %c0_46] : memref<64x32xf32, #tpu.memory_space<vmem>>, vector<64x32xf32>
    %cst_47 = arith.constant dense<0.000000e+00> : vector<64x32xf32>
    %34 = tpu.matmul %33, %13, %cst_47 {dimension_numbers = #tpu.dot_dimension_numbers<[1], [0], [0], [1], [0, 0, 1, 1], [], []>} : vector<64x32xf32>, vector<32x32xf32>, vector<64x32xf32> -> vector<64x32xf32>
    %35 = vector.broadcast %17 : vector<1x32xf32> to vector<64x32xf32>
    %36 = arith.addf %34, %35 : vector<64x32xf32>
    %cst_48 = arith.constant 0.000000e+00 : f32
    %37 = vector.broadcast %cst_48 : f32 to vector<64x32xf32>
    %38 = arith.maximumf %36, %37 : vector<64x32xf32>
    %cst_49 = arith.constant dense<0.000000e+00> : vector<64x32xf32>
    %39 = tpu.matmul %38, %15, %cst_49 {dimension_numbers = #tpu.dot_dimension_numbers<[1], [0], [0], [1], [0, 0, 1, 1], [], []>} : vector<64x32xf32>, vector<32x32xf32>, vector<64x32xf32> -> vector<64x32xf32>
    %40 = vector.broadcast %19 : vector<1x32xf32> to vector<64x32xf32>
    %41 = arith.addf %39, %40 : vector<64x32xf32>
    %cst_50 = arith.constant 0.000000e+00 : f32
    %42 = vector.broadcast %cst_50 : f32 to vector<64x32xf32>
    %43 = arith.maximumf %41, %42 : vector<64x32xf32>
    %cst_51 = arith.constant dense<0.000000e+00> : vector<64x2xf32>
    %44 = tpu.matmul %43, %20, %cst_51 {dimension_numbers = #tpu.dot_dimension_numbers<[1], [0], [0], [1], [0, 0, 1, 1], [], []>} : vector<64x32xf32>, vector<32x2xf32>, vector<64x2xf32> -> vector<64x2xf32>
    %45 = vector.broadcast %21 : vector<1x2xf32> to vector<64x2xf32>
    %46 = arith.addf %44, %45 : vector<64x2xf32>
    %cst_52 = arith.constant -5.000000e+00 : f32
    %cst_53 = arith.constant 5.000000e+00 : f32
    %47 = vector.broadcast %cst_52 : f32 to vector<64x2xf32>
    %48 = arith.maximumf %47, %46 : vector<64x2xf32>
    %49 = vector.broadcast %cst_53 : f32 to vector<64x2xf32>
    %50 = arith.minimumf %49, %48 : vector<64x2xf32>
    %c0_54 = arith.constant 0 : index
    %c0_55 = arith.constant 0 : index
    %51 = vector.load %arg16[%c0_54, %c0_55] : memref<64x2xf32, #tpu.memory_space<vmem>>, vector<64x2xf32>
    tpu.vector_store %arg16[%c0_54, %c0_55], %50 {strides = array<i32>} : memref<64x2xf32, #tpu.memory_space<vmem>>, vector<64x2xf32>,
    %c0_56 = arith.constant 0 : index
    %c0_57 = arith.constant 0 : index
    %52 = vector.load %arg2[%c0_56, %c0_57] : memref<64x2xf32, #tpu.memory_space<vmem>>, vector<64x2xf32>
    %c0_58 = arith.constant 0 : index
    %c0_59 = arith.constant 0 : index
    %53 = vector.load %arg3[%c0_58, %c0_59] : memref<64x1xf32, #tpu.memory_space<vmem>>, vector<64x1xf32>
    %cst_60 = arith.constant 5.000000e-01 : f32
    %54 = vector.broadcast %cst_60 : f32 to vector<64x1xf32>
    %55 = arith.cmpf ogt, %53, %54 : vector<64x1xf32>
    %56 = arith.extui %55 : vector<64x1xi1> to vector<64x1xi32>
    %57 = arith.sitofp %56 : vector<64x1xi32> to vector<64x1xf32>
    %cst_61 = arith.constant 0.000000e+00 : f32
    %58 = vector.broadcast %cst_61 : f32 to vector<64x2xf32>
    %59 = arith.maximumf %50, %58 : vector<64x2xf32>
    %60 = arith.mulf %50, %52 : vector<64x2xf32>
    %61 = arith.subf %59, %60 : vector<64x2xf32>
    %62 = math.absf %50 : vector<64x2xf32>
    %cst_62 = arith.constant 0.000000e+00 : f32
    %63 = vector.broadcast %cst_62 : f32 to vector<64x2xf32>
    %64 = arith.subf %63, %62 : vector<64x2xf32>
    %65 = math.exp %64 : vector<64x2xf32>
    %66 = math.log1p %65 : vector<64x2xf32>
    %67 = arith.addf %61, %66 : vector<64x2xf32>
    %68 = vector.broadcast %57 : vector<64x1xf32> to vector<64x2xf32>
    %69 = arith.mulf %67, %68 : vector<64x2xf32>
    %70 = vector.shape_cast %69 : vector<64x2xf32> to vector<1x64x2xf32>
    %cst_63 = arith.constant dense<0.000000e+00> : vector<1xf32>
    %71 = vector.multi_reduction <add>, %70, %cst_63 [1, 2] : vector<1x64x2xf32> to vector<1xf32>
    %72 = vector.shape_cast %71 : vector<1xf32> to vector<1x1x1xf32>
    %73 = vector.extract %72[0, 0, 0] : f32 from vector<1x1x1xf32>
    %74 = vector.shape_cast %57 : vector<64x1xf32> to vector<1x64x1xf32>
    %cst_64 = arith.constant dense<0.000000e+00> : vector<1xf32>
    %75 = vector.multi_reduction <add>, %74, %cst_64 [1, 2] : vector<1x64x1xf32> to vector<1xf32>
    %76 = vector.shape_cast %75 : vector<1xf32> to vector<1x1x1xf32>
    %77 = vector.extract %76[0, 0, 0] : f32 from vector<1x1x1xf32>
    %cst_65 = arith.constant 2.000000e+00 : f32
    %78 = arith.mulf %77, %cst_65 : f32
    %cst_66 = arith.constant 1.000000e+00 : f32
    %79 = arith.maximumf %78, %cst_66 : f32
    %80 = arith.divf %73, %79 : f32
    %81 = vector.broadcast %80 : f32 to vector<1x1xf32>
    %c0_67 = arith.constant 0 : index
    %c0_68 = arith.constant 0 : index
    %82 = vector.load %arg17[%c0_67, %c0_68] : memref<1x1xf32, #tpu.memory_space<vmem>>, vector<1x1xf32>
    tpu.vector_store %arg17[%c0_67, %c0_68], %81 {strides = array<i32>} : memref<1x1xf32, #tpu.memory_space<vmem>>, vector<1x1xf32>,
    return
  }
  func.func @transform_0(%arg0: i32) -> (i32, i32, i32) {
    %c0_i32 = arith.constant 0 : i32
    %c0_i32_0 = arith.constant 0 : i32
    %c0_i32_1 = arith.constant 0 : i32
    %c0_i32_2 = arith.constant 0 : i32
    return %c0_i32, %c0_i32_0, %c0_i32_1 : i32, i32, i32
  }
  func.func @transform_1(%arg0: i32) -> (i32, i32) {
    %c0_i32 = arith.constant 0 : i32
    %c0_i32_0 = arith.constant 0 : i32
    %c0_i32_1 = arith.constant 0 : i32
    return %c0_i32, %c0_i32_0 : i32, i32
  }
  func.func @transform_2(%arg0: i32) -> (i32, i32) {
    %c0_i32 = arith.constant 0 : i32
    %c0_i32_0 = arith.constant 0 : i32
    %c0_i32_1 = arith.constant 0 : i32
    return %c0_i32, %c0_i32_0 : i32, i32
  }
  func.func @transform_3(%arg0: i32) -> (i32, i32) {
    %c0_i32 = arith.constant 0 : i32
    %c0_i32_0 = arith.constant 0 : i32
    %c0_i32_1 = arith.constant 0 : i32
    return %c0_i32, %c0_i32_0 : i32, i32
  }
  func.func @transform_4(%arg0: i32) -> (i32, i32) {
    %c0_i32 = arith.constant 0 : i32
    %c0_i32_0 = arith.constant 0 : i32
    %c0_i32_1 = arith.constant 0 : i32
    return %c0_i32, %c0_i32_0 : i32, i32
  }
  func.func @transform_5(%arg0: i32) -> (i32, i32, i32) {
    %c0_i32 = arith.constant 0 : i32
    %c0_i32_0 = arith.constant 0 : i32
    %c0_i32_1 = arith.constant 0 : i32
    %c0_i32_2 = arith.constant 0 : i32
    return %c0_i32, %c0_i32_0, %c0_i32_1 : i32, i32, i32
  }
  func.func @transform_6(%arg0: i32) -> (i32, i32, i32) {
    %c0_i32 = arith.constant 0 : i32
    %c0_i32_0 = arith.constant 0 : i32
    %c0_i32_1 = arith.constant 0 : i32
    %c0_i32_2 = arith.constant 0 : i32
    return %c0_i32, %c0_i32_0, %c0_i32_1 : i32, i32, i32
  }
  func.func @transform_7(%arg0: i32) -> (i32, i32) {
    %c0_i32 = arith.constant 0 : i32
    %c0_i32_0 = arith.constant 0 : i32
    %c0_i32_1 = arith.constant 0 : i32
    return %c0_i32, %c0_i32_0 : i32, i32
  }
  func.func @transform_8(%arg0: i32) -> (i32, i32) {
    %c0_i32 = arith.constant 0 : i32
    %c0_i32_0 = arith.constant 0 : i32
    %c0_i32_1 = arith.constant 0 : i32
    return %c0_i32, %c0_i32_0 : i32, i32
  }
  func.func @transform_9(%arg0: i32) -> (i32, i32, i32) {
    %c0_i32 = arith.constant 0 : i32
    %c0_i32_0 = arith.constant 0 : i32
    %c0_i32_1 = arith.constant 0 : i32
    %c0_i32_2 = arith.constant 0 : i32
    return %c0_i32, %c0_i32_0, %c0_i32_1 : i32, i32, i32
  }
  func.func @transform_10(%arg0: i32) -> (i32, i32, i32) {
    %c0_i32 = arith.constant 0 : i32
    %c0_i32_0 = arith.constant 0 : i32
    %c0_i32_1 = arith.constant 0 : i32
    %c0_i32_2 = arith.constant 0 : i32
    return %c0_i32, %c0_i32_0, %c0_i32_1 : i32, i32, i32
  }
  func.func @transform_11(%arg0: i32) -> (i32, i32) {
    %c0_i32 = arith.constant 0 : i32
    %c0_i32_0 = arith.constant 0 : i32
    %c0_i32_1 = arith.constant 0 : i32
    return %c0_i32, %c0_i32_0 : i32, i32
  }
  func.func @transform_12(%arg0: i32) -> (i32, i32) {
    %c0_i32 = arith.constant 0 : i32
    %c0_i32_0 = arith.constant 0 : i32
    %c0_i32_1 = arith.constant 0 : i32
    return %c0_i32, %c0_i32_0 : i32, i32
  }
  func.func @transform_13(%arg0: i32) -> (i32, i32) {
    %c0_i32 = arith.constant 0 : i32
    %c0_i32_0 = arith.constant 0 : i32
    %c0_i32_1 = arith.constant 0 : i32
    return %c0_i32, %c0_i32_0 : i32, i32
  }
  func.func @transform_14(%arg0: i32) -> (i32, i32) {
    %c0_i32 = arith.constant 0 : i32
    %c0_i32_0 = arith.constant 0 : i32
    %c0_i32_1 = arith.constant 0 : i32
    return %c0_i32, %c0_i32_0 : i32, i32
  }
  func.func @transform_15(%arg0: i32) -> (i32, i32) {
    %c0_i32 = arith.constant 0 : i32
    %c0_i32_0 = arith.constant 0 : i32
    %c0_i32_1 = arith.constant 0 : i32
    return %c0_i32, %c0_i32_0 : i32, i32
  }
  func.func @transform_16(%arg0: i32) -> (i32, i32) {
    %c0_i32 = arith.constant 0 : i32
    %c0_i32_0 = arith.constant 0 : i32
    %c0_i32_1 = arith.constant 0 : i32
    return %c0_i32, %c0_i32_0 : i32, i32
  }
}

</mosaic_0001>

<bundles_post_ra>
// kernel: tpu_custom_call.1
= control target key start
LH: loop header
LB: loop body
LE: loop exit
PB: predicated region body
PF: predicated region fallthrough
CT: control target
= control target key end

     0   :  { %s3091_s0 = inlined_call_operand.vmem [shape: f32[8,8,4], index: 0, kind: input, shape index: {}]   ;;  %s3092_s1 = inlined_call_operand.vmem [shape: f32[64,2], index: 1, kind: input, shape index: {}]   ;;  %s3093_s2 = inlined_call_operand.vmem [shape: f32[64,1], index: 2, kind: input, shape index: {}]   ;;  %s3094_s3 = inlined_call_operand.vmem [shape: f32[4,32], index: 3, kind: input, shape index: {}]   ;;  %s3095_s4 = inlined_call_operand.vmem [shape: f32[1,32], index: 4, kind: input, shape index: {}]   ;;  %s3096_s5 = inlined_call_operand.vmem [shape: f32[2,32,32], index: 5, kind: input, shape index: {}]   ;;  %s3097_s6 = inlined_call_operand.vmem [shape: f32[2,1,32], index: 6, kind: input, shape index: {}]   ;;  %s3098_s7 = inlined_call_operand.vmem [shape: f32[32,128], index: 7, kind: input, shape index: {}]   ;;  %s3099_s8 = inlined_call_operand.vmem [shape: f32[1,128], index: 8, kind: input, shape index: {}]   ;;  %s3100_s9 = inlined_call_operand.vmem [shape: f32[2,32,32], index: 9, kind: input, shape index: {}]   ;;  %s3101_s10 = inlined_call_operand.vmem [shape: f32[2,1,32], index: 10, kind: input, shape index: {}]   ;;  %s3102_s11 = inlined_call_operand.vmem [shape: f32[32,2], index: 11, kind: input, shape index: {}]   ;;  %s3103_s12 = inlined_call_operand.vmem [shape: f32[1,2], index: 12, kind: input, shape index: {}]   ;;  %s3104_s13 = inlined_call_operand.vmem [shape: f32[4,128], index: 13, kind: input, shape index: {}]   ;;  %s3105_s14 = inlined_call_operand.vmem [shape: f32[128,32], index: 14, kind: input, shape index: {}]   ;;  %s3106_s15 = inlined_call_operand.vmem [shape: f32[64,2], index: 15, kind: output, shape index: {0}]   ;;  %s3107_s16 = inlined_call_operand.hbm [shape: f32[1,1], index: 16, kind: output, shape index: {1}]  }
   0x1   :  { %3112 = sst [smem:[#allocation14_spill]] %s3091_s0 }
   0x2   :  { %22 = vsyncpa [#allocation4], 0  ;;  %v2386_v0 = vld [vmem:[%s3096_s5] sm:$0xff]  ;;  %v2391_v1 = vld [vmem:[%s3096_s5 + $0x8] sm:$0xff]  ;;  %v3108_v5 = vmov 0.0   ;;  %vm2291_vm0 = vmmov 0  }
   0x3   :  { %3113 = vst [vmem:[#allocation6_spill] sm:$0xff] %v2386_v0  ;;  %3114 = vst [vmem:[#allocation7_spill] sm:$0xff] %v2391_v1  ;;  %v2396_v2 = vld [vmem:[%s3096_s5 + $0x10] sm:$0xff]  ;;  %v2401_v3 = vld [vmem:[%s3096_s5 + $0x18] sm:$0xff]  ;;  %1831 = vmatprep.subr.mxu0 %v3108_v5  ;;  %1833 = vmatprep.mubr.msk.f32.mxu0 %vm2291_vm0, %v3108_v5  ;;  %vm117_vm1 = vcmask 1043456   ;;  %vm113_vm2 = vcmask 31744  }
   0x4   :  { %3115 = vst [vmem:[#allocation8_spill] sm:$0xff] %v2396_v2  ;;  %3116 = vst [vmem:[#allocation9_spill] sm:$0xff] %v2401_v3  ;;  %v2406_v4 = vld [vmem:[%s3096_s5 + $0x20] sm:$0xff]  ;;  %v2412_v6 = vld [vmem:[%s3096_s5 + $0x28] sm:$0xff]  ;;  %s3121_s20 = sld [smem:[#allocation14_spill]]  ;;  %vm192_vm3 = vcmask 261120  }
   0x5   :  { %3117 = vst [vmem:[#allocation10_spill] sm:$0xff] %v2406_v4  ;;  %3118 = vst [vmem:[#allocation11_spill] sm:$0xff] %v2412_v6  ;;  %v2417_v7 = vld [vmem:[%s3096_s5 + $0x30] sm:$0xff]  ;;  %v2422_v8 = vld [vmem:[%s3096_s5 + $0x38] sm:$0xff] }
   0x6   :  { %3119 = vst [vmem:[#allocation12_spill] sm:$0xff] %v2417_v7  ;;  %3120 = vst [vmem:[#allocation13_spill] sm:$0xff] %v2422_v8  ;;  %v2428_v9 = vld [vmem:[%s3097_s6] ss:$0 sm:$0xff]  ;;  %v2433_v10 = vld [vmem:[%s3097_s6 + $0x1] ss:$0 sm:$0xff] }
   0x7   :  { %v2438_v11 = vld [vmem:[%s3098_s7] sm:$0xff]  ;;  %v2443_v12 = vld [vmem:[%s3098_s7 + $0x8] sm:$0xff]  ;;  %v2448_v13 = vld [vmem:[%s3098_s7 + $0x10] sm:$0xff] }
   0x8   :  { %v2453_v14 = vld [vmem:[%s3098_s7 + $0x18] sm:$0xff]  ;;  %v2458_v15 = vld [vmem:[%s3099_s8] ss:$0 sm:$0xff]  ;;  %v2468_v17 = vld [vmem:[%s3100_s9 + $0x8] sm:$0xff] }
   0x9   :  { %v2463_v16 = vld [vmem:[%s3100_s9] sm:$0xff]  ;;  %v2473_v18 = vld [vmem:[%s3100_s9 + $0x10] sm:$0xff]  ;;  %v2478_v19 = vld [vmem:[%s3100_s9 + $0x18] sm:$0xff] }
   0xa   :  { %v2483_v20 = vld [vmem:[%s3100_s9 + $0x20] sm:$0xff]  ;;  %v2488_v21 = vld [vmem:[%s3100_s9 + $0x28] sm:$0xff]  ;;  %v2493_v22 = vld [vmem:[%s3100_s9 + $0x30] sm:$0xff] }
   0xb   :  { %v2498_v23 = vld [vmem:[%s3100_s9 + $0x38] sm:$0xff]  ;;  %v2503_v24 = vld [vmem:[%s3101_s10] ss:$0 sm:$0xff]  ;;  %v2508_v25 = vld [vmem:[%s3101_s10 + $0x1] ss:$0 sm:$0xff] }
   0xc   :  { %v2513_v26 = vld [vmem:[%s3102_s11] sm:$0xff]  ;;  %v2518_v27 = vld [vmem:[%s3102_s11 + $0x8] sm:$0xff]  ;;  %v2523_v28 = vld [vmem:[%s3102_s11 + $0x10] sm:$0xff] }
   0xd   :  { %v2528_v29 = vld [vmem:[%s3102_s11 + $0x18] sm:$0xff]  ;;  %v2533_v30 = vld [vmem:[%s3103_s12] ss:$0 sm:$0xff]  ;;  %v2548_v33 = vld [vmem:[%s3105_s14 + $0x8] sm:$0xff] }
   0xe   :  { %v2538_v31 = vld [vmem:[%s3104_s13] sm:$0xf]  ;;  %v2553_v34 = vld [vmem:[%s3105_s14 + $0x10] sm:$0xff]  ;;  %v2558_v35 = vld [vmem:[%s3105_s14 + $0x18] sm:$0xff] }
   0xf   :  { %v2543_v32 = vld [vmem:[%s3105_s14] sm:$0xff]  ;;  %v2568_v37 = vld [vmem:[%s3105_s14 + $0x28] sm:$0xff]  ;;  %v2573_v38 = vld [vmem:[%s3105_s14 + $0x30] sm:$0xff] }
  0x10   :  { %v2563_v36 = vld [vmem:[%s3105_s14 + $0x20] sm:$0xff]  ;;  %v2578_v39 = vld [vmem:[%s3105_s14 + $0x38] sm:$0xff]  ;;  %v2588_v41 = vld [vmem:[%s3105_s14 + $0x48] sm:$0xff] }
  0x11   :  { %v2583_v40 = vld [vmem:[%s3105_s14 + $0x40] sm:$0xff]  ;;  %v2593_v42 = vld [vmem:[%s3105_s14 + $0x50] sm:$0xff]  ;;  %v2598_v43 = vld [vmem:[%s3105_s14 + $0x58] sm:$0xff] }
  0x12   :  { %v2603_v44 = vld [vmem:[%s3105_s14 + $0x60] sm:$0xff]  ;;  %v2608_v45 = vld [vmem:[%s3105_s14 + $0x68] sm:$0xff]  ;;  %v2613_v46 = vld [vmem:[%s3105_s14 + $0x70] sm:$0xff] }
  0x13   :  { %v2618_v47 = vld [vmem:[%s3105_s14 + $0x78] sm:$0xff]  ;;  %v53_v48 = vld [vmem:[%s3094_s3] sm:$0xf]  ;;  %s2636_s3 = smov 1  }
  0x14   :  { %v106_v49 = vld [vmem:[%s3121_s20] sm:$0xff]   ;;  %1832 = vmatpush3.msk.msra.mxu0 %vm117_vm1, %v53_v48 }
  0x15   :  { %1834 = vmatmul.mubr.msk.f32.vlgmr.msra.gmra.mrb[0].mxu0 %vm113_vm2, %v106_v49  ;;  %v1669_v50 = vld [vmem:[%s3095_s4] ss:$0 sm:$0xff] }
  0xe8   :  { %v187_v51 = vpop.f32.mrb[0].mxu0 }
  0xe9   :  { %v188_v52 = vadd.f32 %v1669_v50, %v187_v51  ;;  %v1835_v53 = vpop.f32.mrb[1].mxu0 }
  0xeb   :  { %2187 = vtanh.f32 %v188_v52 }
  0xf5   :  { %v2188_v54 = vpop.eup %2187  }
  0xf6   :  { %193 = vst.msk [vmem:[#allocation2] sm:$0xff] %vm192_vm3, %v2188_v54 }
  0xf7 LB: > { %v3110_v55 = vmov 0.0   ;;  %vm2293_vm4 = vmmov 0   ;;  %v3122_v0 = vld [vmem:[#allocation6_spill] sm:$0xff]  ;;  %v3123_v1 = vld [vmem:[#allocation7_spill] sm:$0xff]  ;;  %s1672_s4 = sshll.u32 %s2288_s3, 3  ;;  %v2294_v57 = vmov 0.0|0.0   ;;  %v2050_v53 = vpack.c.bf16 %v2443_v12, %v2438_v11  ;;  %s2288_s3 = sphi %s2636_s3, %s199_s3   ;;  %v2284_v54 = vphi %v2188_v54, %v887_v54   ;;  %v2280_v49 = vphi %v106_v49, %v3132_v49  }
  0xf8   : > { %1836 = vmatprep.subr.mxu0 %v3110_v55  ;;  %1838 = vmatprep.mubr.msk.f32.mxu0 %vm2293_vm4, %v3110_v55  ;;  %v2038_v56 = vpack.c.bf16 %v3123_v1, %v3122_v0  ;;  %s3124_s9 = sld [smem:[#allocation14_spill]]  ;;  %v3125_v2 = vld [vmem:[#allocation8_spill] sm:$0xff]  ;;  %v3126_v3 = vld [vmem:[#allocation9_spill] sm:$0xff]  ;;  %v3127_v4 = vld [vmem:[#allocation10_spill] sm:$0xff]  ;;  %v2077_v5 = vpack.c.bf16 %v2618_v47, %v2613_v46  ;;  %s888_s7 = scalar_lea.vmem [#allocation2], %s1672_s4 }
  0xf9   : > { %1837 = vmatpush3.msk.msra.mxu0 %vm117_vm1, %v2538_v31  ;;  %2079 = vmatprep.subr.bf16.mxu1 %v2294_v57  ;;  %v2041_v60 = vpack.c.bf16 %v3126_v3, %v3125_v2  ;;  %v3128_v6 = vld [vmem:[#allocation11_spill] sm:$0xff]  ;;  %v3129_v7 = vld [vmem:[#allocation12_spill] sm:$0xff]  ;;  %v3130_v8 = vld [vmem:[#allocation13_spill] sm:$0xff]  ;;  %s199_s3 = sadd.s32 1, %s2288_s3  }
  0xfa   : > { %2037 = vmatprep.subr.bf16.mxu0 %v2294_v57  ;;  %2081 = vmatpush3.bf16.msra.mxu1 %v2038_v56  ;;  %v2044_v61 = vpack.c.bf16 %v3128_v6, %v3127_v4  ;;  %v2047_v62 = vpack.c.bf16 %v3130_v8, %v3129_v7  ;;  %v3131_v8 = vmov 0.0   ;;  %p196_p0 = scmp.ge.s32.totalorder %s199_s3, 8  }
  0xfb   : > { %2082 = vmatprep.subr.bf16.mxu1 %v2294_v57  ;;  %1917 = vmatprep.mubr.msk.f32.mxu1 %vm2293_vm4, %v3110_v55  ;;  %v2141_v46 = vpack.c.bf16 (%p196_p0), %v2528_v29, %v2523_v28  ;;  %v1352_v47 = vld [vmem:[%s3093_s2] sm:$0xff] (%p196_p0)  ;;  %vm1592_vm5 = vcmask (%p196_p0), 7168   ;;  %v1355_v28 = vld [vmem:[%s3093_s2 + $0x18] sm:$0xff] (%p196_p0)  ;;  %vm1335_vm14 = vcmask (%p196_p0), 15360   ;;  %s2296_s3 = smov (%p196_p0), 1.0   ;;  %s2297_s14 = smov (%p196_p0), [#allocation3]  }
  0xfc   :  { %vm1360_vm6 = vcmp.gt.f32.partialorder (%p196_p0), %v1352_v47, 0.5  ;;  %v1356_v29 = vld [vmem:[%s3093_s2 + $0x20] sm:$0xff] (%p196_p0)  ;;  %vm1363_vm9 = vcmp.gt.f32.partialorder (%p196_p0), %v1355_v28, 0.5  ;;  %s1634_s23 = sshll.u32 (%p196_p0), %s2297_s14, 4  ;;  %s1635_s23 = int_to_ptr.vmem [resolvable:$true] %s1634_s23 }
  0xfd   :  { %vm1364_vm10 = vcmp.gt.f32.partialorder (%p196_p0), %v1356_v29, 0.5  ;;  %s2246_s25 = scalar_lea.vmem (%p196_p0), %s1635_s23, 32  ;;  %p2247_p2 = scmp.lt.s32.totalorder (%p196_p0), %s1635_s23, %s1635_s23 }
  0xfe   : > { %s203_s24 = scalar_lea.vmem %s3124_s9, %s1672_s4  ;;  %2084 = vmatpush3.bf16.msra.mxu1 %v2041_v60 }
  0xff   : > { %v2660_v58 = vld [vmem:[%s203_s24] sm:$0xff]   ;;  %2085 = vmatprep.subr.bf16.mxu1 %v2294_v57 }
 0x100   : > { %v205_v59 = vsub.f32 %v2660_v58, %v2280_v49 }
 0x102   : > { %1839 = vmatmul.mubr.msk.f32.vlgmr.msra.gmra.mrb[0].mxu0 %vm113_vm2, %v205_v59 }
 0x103   : > { %2039 = vmatpush3.bf16.msra.mxu0 %v2038_v56  ;;  %1849 = vmatprep.mubr.msk.f32.mxu0 %vm2293_vm4, %v3110_v55  ;;  %v2053_v56 = vpack.c.bf16 %v2453_v14, %v2448_v13 }
 0x104   : > { %2040 = vmatprep.subr.bf16.mxu0 %v2294_v57 }
 0x107   : > { %2042 = vmatpush3.bf16.msra.mxu0 %v2041_v60 }
 0x108   : > { %2043 = vmatprep.subr.bf16.mxu0 %v2294_v57 }
 0x10a   : > { %1850 = vmatmul.mubr.msk.f32.vlgmr.msra.gmra.mrb[2].mxu0 %vm192_vm3, %v2284_v54 }
 0x10b   : > { %1860 = vmatprep.mubr.msk.f32.mxu0 %vm2293_vm4, %v3110_v55  ;;  %2045 = vmatpush3.bf16.msra.mxu0 %v2044_v61 }
 0x10c   : > { %2046 = vmatprep.subr.bf16.mxu0 %v2294_v57 }
 0x10f   : > { %2048 = vmatpush3.bf16.msra.mxu0 %v2047_v62 }
 0x110   : > { %2049 = vmatprep.subr.bf16.mxu0 %v2294_v57 }
 0x1d5   : > { %v2684_v63 = vpop.f32.mrb[0].mxu0 }
 0x1d6   : > { %v1840_v48 = vpop.f32.mrb[1].mxu0 }
 0x1dd   : > { %v357_v49 = vpop.f32.mrb[2].mxu0 }
 0x1de   : > { %v358_v50 = vadd.f32 %v2428_v9, %v357_v49  ;;  %v1851_v51 = vpop.f32.mrb[3].mxu0  ;;  %v2056_v49 = vpack.c.bf16 %v2548_v33, %v2543_v32 }
 0x1df   : > { %v2059_v51 = vpack.c.bf16 %v2558_v35, %v2553_v34 }
 0x1e0   : > { %2189 = vtanh.f32 %v358_v50 }
 0x1ea   : > { %v2190_v52 = vpop.eup %2189 }
 0x1eb   : > { %1861 = vmatmul.mubr.msk.f32.vlgmr.msra.gmra.mrb[4].mxu0 %vm192_vm3, %v2190_v52  ;;  %v2062_v52 = vpack.c.bf16 %v2568_v37, %v2563_v36 }
 0x1ec   : > { %1871 = vmatprep.mubr.msk.f32.mxu0 %vm2293_vm4, %v3110_v55  ;;  %2051 = vmatpush3.bf16.msra.mxu0 %v2050_v53 }
 0x1ed   : > { %2052 = vmatprep.subr.bf16.mxu0 %v2294_v57 }
 0x1f0   : > { %2054 = vmatpush3.bf16.msra.mxu0 %v2053_v56 }
 0x1f1   : > { %2055 = vmatprep.subr.bf16.mxu0 %v2294_v57 }
 0x2be   : > { %v437_v59 = vpop.f32.mrb[4].mxu0 }
 0x2bf   : > { %v438_v60 = vadd.f32 %v2433_v10, %v437_v59  ;;  %v1862_v48 = vpop.f32.mrb[5].mxu0  ;;  %v2065_v59 = vpack.c.bf16 %v2578_v39, %v2573_v38 }
 0x2c0   : > { %v2071_v48 = vpack.c.bf16 %v2598_v43, %v2593_v42 }
 0x2c1   : > { %2191 = vtanh.f32 %v438_v60  ;;  %v2068_v60 = vpack.c.bf16 %v2588_v41, %v2583_v40 }
 0x2cb   : > { %v2192_v50 = vpop.eup %2191 }
 0x2cc   : > { %1872 = vmatmul.mubr.msk.f32.vlgmr.msra.gmra.mrb[6].mxu0 %vm192_vm3, %v2192_v50  ;;  %v2074_v50 = vpack.c.bf16 %v2608_v45, %v2603_v44 }
 0x2cd   : > { %2057 = vmatpush3.bf16.msra.mxu0 %v2056_v49  ;;  %1906 = vmatprep.mubr.msk.f32.mxu0 %vm2293_vm4, %v3110_v55 }
 0x2ce   : > { %2058 = vmatprep.subr.bf16.mxu0 %v2294_v57 }
 0x2d1   : > { %2060 = vmatpush3.bf16.msra.mxu0 %v2059_v51 }
 0x2d2   : > { %2061 = vmatprep.subr.bf16.mxu0 %v2294_v57 }
 0x2d5   : > { %2063 = vmatpush3.bf16.msra.mxu0 %v2062_v52 }
 0x2d6   : > { %2064 = vmatprep.subr.bf16.mxu0 %v2294_v57 }
 0x2d9   : > { %2066 = vmatpush3.bf16.msra.mxu0 %v2065_v59 }
 0x2da   : > { %2067 = vmatprep.subr.bf16.mxu0 %v2294_v57 }
 0x2dd   : > { %2069 = vmatpush3.bf16.msra.mxu0 %v2068_v60 }
 0x2de   : > { %2070 = vmatprep.subr.bf16.mxu0 %v2294_v57 }
 0x2e1   : > { %2072 = vmatpush3.bf16.msra.mxu0 %v2071_v48 }
 0x2e2   : > { %2073 = vmatprep.subr.bf16.mxu0 %v2294_v57 }
 0x2e5   : > { %2075 = vmatpush3.bf16.msra.mxu0 %v2074_v50 }
 0x2e6   : > { %2076 = vmatprep.subr.bf16.mxu0 %v2294_v57 }
 0x2e9   : > { %2078 = vmatpush3.bf16.msra.mxu0 %v2077_v5 }
 0x39f   : > { %v517_v55 = vpop.f32.mrb[6].mxu0 }
 0x3a0   : > { %v518_v0 = vadd.f32 %v2458_v15, %v517_v55  ;;  %v1873_v1 = vpop.f32.mrb[7].mxu0 }
 0x3a2   : > { %2193 = vtanh.f32 %v518_v0 }
 0x3ac   : > { %v2194_v2 = vpop.eup %2193 }
 0x3ad   : > { %v522_v3 = vmul.f32 %v2194_v2, %v2684_v63 }
 0x3af   : > { %1907 = vmatmul.mubr.f32.vlgmr.msra.gmra.mrb[8].mxu0 %v522_v3 }
 0x482   : > { %v589_v4 = vpop.f32.mrb[8].mxu0 }
 0x483   : > { %v593_v6 = vadd.f32 %v2284_v54, %v589_v4  ;;  %v1908_v7 = vpop.f32.mrb[9].mxu0 }
 0x485   : > { %1918 = vmatmul.mubr.msk.f32.vlgmr.msra.gmra.mrb[0].mxu1 %vm192_vm3, %v593_v6 }
 0x486   : > { %2087 = vmatpush3.bf16.msra.mxu1 %v2044_v61  ;;  %1928 = vmatprep.mubr.msk.f32.mxu1 %vm2293_vm4, %v3131_v8 }
 0x487   : > { %2088 = vmatprep.subr.bf16.mxu1 %v2294_v57 }
 0x48a   : > { %2090 = vmatpush3.bf16.msra.mxu1 %v2047_v62 }
 0x48b   : > { %2091 = vmatprep.subr.bf16.mxu1 %v2294_v57 }
 0x558   : > { %v663_v0 = vpop.f32.mrb[0].mxu1 }
 0x559   : > { %v664_v1 = vadd.f32 %v2428_v9, %v663_v0  ;;  %v1919_v2 = vpop.f32.mrb[1].mxu1 }
 0x55b   : > { %2195 = vtanh.f32 %v664_v1 }
 0x565   : > { %v2196_v3 = vpop.eup %2195 }
 0x566   : > { %1929 = vmatmul.mubr.msk.f32.vlgmr.msra.gmra.mrb[2].mxu1 %vm192_vm3, %v2196_v3 }
 0x567   : > { %2093 = vmatpush3.bf16.msra.mxu1 %v2050_v53  ;;  %1939 = vmatprep.mubr.msk.f32.mxu1 %vm2293_vm4, %v3131_v8 }
 0x568   : > { %2094 = vmatprep.subr.bf16.mxu1 %v2294_v57 }
 0x56b   : > { %2096 = vmatpush3.bf16.msra.mxu1 %v2053_v56 }
 0x56c   : > { %2097 = vmatprep.subr.bf16.mxu1 %v2294_v57 }
 0x639   : > { %v737_v4 = vpop.f32.mrb[2].mxu1 }
 0x63a   : > { %v738_v7 = vadd.f32 %v2433_v10, %v737_v4  ;;  %v1930_v54 = vpop.f32.mrb[3].mxu1 }
 0x63c   : > { %2197 = vtanh.f32 %v738_v7 }
 0x646   : > { %v2198_v55 = vpop.eup %2197 }
 0x647   : > { %1940 = vmatmul.mubr.msk.f32.vlgmr.msra.gmra.mrb[4].mxu1 %vm192_vm3, %v2198_v55  ;;  %v1357_v55 = vld [vmem:[%s3093_s2 + $0x28] sm:$0xff] (%p196_p0) }
 0x648   : > { %2099 = vmatpush3.bf16.msra.mxu1 %v2056_v49  ;;  %1974 = vmatprep.mubr.msk.f32.mxu1 %vm2293_vm4, %v3131_v8  ;;  %vm1365_vm11 = vcmp.gt.f32.partialorder (%p196_p0), %v1357_v55, 0.5 }
 0x649   : > { %2100 = vmatprep.subr.bf16.mxu1 %v2294_v57 }
 0x64c   : > { %2102 = vmatpush3.bf16.msra.mxu1 %v2059_v51 }
 0x64d   : > { %2103 = vmatprep.subr.bf16.mxu1 %v2294_v57 }
 0x650   : > { %2105 = vmatpush3.bf16.msra.mxu1 %v2062_v52  ;;  %v1354_v52 = vld [vmem:[%s3093_s2 + $0x10] sm:$0xff] (%p196_p0) }
 0x651   : > { %2106 = vmatprep.subr.bf16.mxu1 %v2294_v57  ;;  %vm1362_vm8 = vcmp.gt.f32.partialorder (%p196_p0), %v1354_v52, 0.5 }
 0x654   : > { %2108 = vmatpush3.bf16.msra.mxu1 %v2065_v59  ;;  %v2295_v59 = vmov (%p196_p0), 0  }
 0x655   : > { %2109 = vmatprep.subr.bf16.mxu1 %v2294_v57  ;;  %2201 = vset.pattern.permute.xlu0 (%p196_p0), %v2295_v59 }
 0x656   :  { %2207 = vset.pattern.permute.xlu1 (%p196_p0), %v2295_v59 }
 0x658   : > { %2111 = vmatpush3.bf16.msra.mxu1 %v2068_v60  ;;  %v3133_v60 = vmov (%p196_p0), 0.0  }
 0x659   : > { %2112 = vmatprep.subr.bf16.mxu1 %v2294_v57  ;;  %v1721_v0 = vsel (%p196_p0), %vm1362_vm8, 1.0, %v3133_v60 }
 0x65a   :  { %v1596_v4 = vsel (%p196_p0), %vm1592_vm5, %v1721_v0, 0.0 }
 0x65c   : > { %2114 = vmatpush3.bf16.msra.mxu1 %v2071_v48  ;;  %v1719_v48 = vsel (%p196_p0), %vm1360_vm6, 1.0, %v3133_v60 }
 0x65d   : > { %2115 = vmatprep.subr.bf16.mxu1 %v2294_v57  ;;  %v1593_v3 = vsel (%p196_p0), %vm1592_vm5, %v1719_v48, 0.0 }
 0x660   : > { %2117 = vmatpush3.bf16.msra.mxu1 %v2074_v50 }
 0x661   : > { %2118 = vmatprep.subr.bf16.mxu1 %v2294_v57 }
 0x664   : > { %2120 = vmatpush3.bf16.msra.mxu1 %v2077_v5  ;;  %v2121_v5 = vpack.c.bf16 (%p196_p0), %v2468_v17, %v2463_v16  ;;  %v2137_v16 = vpack.c.bf16 (%p196_p0), %v2518_v27, %v2513_v26 }
 0x666   :  { %2122 = vmatprep.subr.bf16.mxu0 (%p196_p0), %v2121_v5  ;;  %2145 = vmatprep.subr.bf16.mxu1 (%p196_p0), %v2121_v5 }
 0x667   :  { %2124 = vmatpush3.bf16.msra.mxu0 (%p196_p0), %v2121_v5 }
 0x71a   : > { %v811_v8 = vpop.f32.mrb[4].mxu1 }
 0x71b   : > { %v812_v61 = vadd.f32 %v2458_v15, %v811_v8  ;;  %v1941_v62 = vpop.f32.mrb[5].mxu1  ;;  %v2133_v15 = vpack.c.bf16 (%p196_p0), %v2498_v23, %v2493_v22  ;;  %v1358_v8 = vld [vmem:[%s3093_s2 + $0x30] sm:$0xff] (%p196_p0) }
 0x71c   :  { %vm1366_vm12 = vcmp.gt.f32.partialorder (%p196_p0), %v1358_v8, 0.5 }
 0x71d   : > { %2199 = vtanh.f32 %v812_v61 }
 0x727   : > { %v2200_v53 = vpop.eup %2199 }
 0x728   : > { %v816_v56 = vmul.f32 %v2200_v53, %v2684_v63  ;;  %v1723_v53 = vsel (%p196_p0), %vm1364_vm10, 1.0, %v3133_v60 }
 0x72a   : > { %1975 = vmatmul.mubr.f32.vlgmr.msra.gmra.mrb[6].mxu1 %v816_v56  ;;  %v1600_v56 = vsel (%p196_p0), %vm1592_vm5, %v1723_v53, 0.0 }
 0x72b   :  { %2147 = vmatpush3.bf16.msra.mxu1 (%p196_p0), %v2121_v5  ;;  %v1724_v5 = vsel (%p196_p0), %vm1365_vm11, 1.0, %v3133_v60 }
 0x7fa   :  { %198 = sbr.rel (!%p196_p0) target bundleno = 247 (0xf7), region = 101 }
 0x7fd   : > { %v883_v49 = vpop.f32.mrb[6].mxu1 }
 0x7fe   : > { %v887_v54 = vadd.f32 %v883_v49, %v593_v6   ;;  %v1976_v51 = vpop.f32.mrb[7].mxu1  ;;  %v3132_v49 = vmov %v2660_v58  ;;  %v2125_v6 = vpack.c.bf16 (%p196_p0), %v2478_v19, %v2473_v18  ;;  %v2129_v58 = vpack.c.bf16 (%p196_p0), %v2488_v21, %v2483_v20 }
 0x7ff   :  { %v1359_v51 = vld [vmem:[%s3093_s2 + $0x38] sm:$0xff] (%p196_p0) }
 0x800   : > { %889 = vst.msk [vmem:[%s888_s7] sm:$0xff] %vm192_vm3, %v887_v54  ;;  %2126 = vmatprep.subr.bf16.mxu0 (%p196_p0), %v2125_v6  ;;  %2146 = vmatprep.subr.bf16.mxu1 (%p196_p0), %v2125_v6  ;;  %v1722_v54 = vsel (%p196_p0), %vm1363_vm9, 1.0, %v3133_v60  ;;  %vm1367_vm13 = vcmp.gt.f32.partialorder (%p196_p0), %v1359_v51, 0.5  ;;  %s2242_s7 = scalar_lea.vmem (%p196_p0), %s1635_s23, 16 }
 0x801   :  { %2128 = vmatpush3.bf16.msra.mxu0 %v2125_v6  ;;  %2148 = vmatpush3.bf16.msra.mxu1 %v2125_v6  ;;  %v1598_v61 = vsel %vm1592_vm5, %v1722_v54, 0.0  ;;  %p2243_p1 = scmp.ne.s32.totalorder %s1635_s23, %s2242_s7  ;;  %p2248_p3 = scmp.lt.s32.totalorder %s2246_s25, %s2242_s7 }
 0x802   :  { %2130 = vmatprep.subr.bf16.mxu1 %v2129_v58  ;;  %2138 = vmatprep.subr.bf16.mxu0 %v2137_v16 }
 0x803   :  { %1537 = vperm.xlu1 %2207, %v1722_v54   ;;  %p2249_p4 = por %p2248_p3, %p2247_p2 }
 0x805   :  { %p2250_p5 = pnand %p2249_p4, %p2243_p1 }
 0x807   :  { %v890_v57 = vld [vmem:[#allocation2] sm:$0xff]  ;;  %v891_v9 = vld [vmem:[#allocation2 + $0x8] sm:$0xff]  ;;  %v892_v11 = vld [vmem:[#allocation2 + $0x10] sm:$0xff]  ;;  %1542 = vperm.xlu1 %2207, %v1723_v53  }
 0x808   :  { %1985 = vmatprep.mubr.msk.f32.mxu0 %vm192_vm3, %v890_v57  ;;  %v894_v63 = vld [vmem:[#allocation2 + $0x20] sm:$0xff]  ;;  %v895_v10 = vld [vmem:[#allocation2 + $0x28] sm:$0xff]  ;;  %v896_v12 = vld [vmem:[#allocation2 + $0x30] sm:$0xff]  ;;  %v1725_v57 = vsel %vm1366_vm12, 1.0, %v3133_v60 }
 0x809   :  { %1991 = vmatprep.mubr.msk.f32.mxu1 %vm192_vm3, %v894_v63  ;;  %1986 = vmatmul.mubr.msk.f32.vlgmr.msra.gmra.mrb[0].mxu0 %vm192_vm3, %v891_v9  ;;  %v893_v13 = vld [vmem:[#allocation2 + $0x18] sm:$0xff]  ;;  %v1726_v63 = vsel %vm1367_vm13, 1.0, %v3133_v60 }
 0x80a   :  { %1992 = vmatmul.mubr.msk.f32.vlgmr.msra.gmra.mrb[0].mxu1 %vm192_vm3, %v895_v10  ;;  %1988 = vmatprep.mubr.msk.f32.mxu0 %vm192_vm3, %v892_v11  ;;  %v897_v14 = vld [vmem:[#allocation2 + $0x38] sm:$0xff] }
 0x80b   :  { %1994 = vmatprep.mubr.msk.f32.mxu1 %vm192_vm3, %v896_v12  ;;  %2132 = vmatpush3.bf16.msra.mxu1 %v2129_v58 }
 0x80c   :  { %2134 = vmatprep.subr.bf16.mxu1 %v2133_v15  ;;  %2140 = vmatpush3.bf16.msra.mxu0 %v2137_v16 }
 0x80d   :  { %1989 = vmatmul.mubr.msk.f32.gmra.mrb[2].mxu0 %vm192_vm3, %v893_v13  ;;  %2142 = vmatprep.subr.bf16.mxu0 %v2141_v46 }
 0x80e   :  { %1995 = vmatmul.mubr.msk.f32.gmra.mrb[2].mxu1 %vm192_vm3, %v897_v14  ;;  %1552 = vperm.xlu1 %2207, %v1725_v57  }
 0x80f   :  { %2136 = vmatpush3.bf16.msra.mxu1 %v2133_v15 }
 0x810   :  { %2144 = vmatpush3.bf16.msra.mxu0 %v2141_v46 }
 0x8dc   :  { %v1987_v17 = vpop.f32.mrb[0].mxu0 }
 0x8dd   :  { %v1993_v18 = vpop.f32.mrb[0].mxu1  ;;  %v1000_v19 = vadd.f32 %v1987_v17, %v2503_v24  ;;  %v994_v20 = vpop.f32.mrb[1].mxu0 }
 0x8de   :  { %v1014_v21 = vpop.f32.mrb[1].mxu1  ;;  %v995_v31 = vadd.f32 %v2503_v24, %v994_v20  ;;  %v1020_v41 = vadd.f32 %v1993_v18, %v2503_v24 }
 0x8df   :  { %v1015_v34 = vadd.f32 %v2503_v24, %v1014_v21  ;;  %v1034_v23 = vmax.f32 %v1000_v19, 0.0 }
 0x8e0   :  { %v1033_v32 = vmax.f32 %v995_v31, 0.0  ;;  %v1990_v33 = vpop.f32.mrb[2].mxu0  ;;  %v1038_v43 = vmax.f32 %v1020_v41, 0.0  ;;  %v1606_v41 = vsel %vm1592_vm5, %v1726_v63, 0.0 }
 0x8e1   :  { %v1996_v22 = vpop.f32.mrb[2].mxu1  ;;  %v1010_v35 = vadd.f32 %v1990_v33, %v2503_v24  ;;  %v1004_v36 = vpop.f32.mrb[3].mxu0  ;;  %v1037_v38 = vmax.f32 %v1015_v34, 0.0 }
 0x8e2   :  { %v1024_v26 = vpop.f32.mrb[3].mxu1  ;;  %v1005_v27 = vadd.f32 %v2503_v24, %v1004_v36  ;;  %2005 = vmatprep.mubr.msk.f32.mxu1 %vm192_vm3, %v1033_v32  ;;  %v1030_v44 = vadd.f32 %v1996_v22, %v2503_v24 }
 0x8e3   :  { %2006 = vmatmul.mubr.msk.f32.vlgmr.msra.gmra.mrb[4].mxu1 %vm192_vm3, %v1034_v23  ;;  %v1025_v39 = vadd.f32 %v2503_v24, %v1024_v26  ;;  %v1036_v40 = vmax.f32 %v1010_v35, 0.0  ;;  %v1353_v24 = vld [vmem:[%s3093_s2 + $0x8] sm:$0xff] }
 0x8e4   :  { %v1035_v37 = vmax.f32 %v1005_v27, 0.0  ;;  %v1040_v45 = vmax.f32 %v1030_v44, 0.0  ;;  %vm1361_vm7 = vcmp.gt.f32.partialorder %v1353_v24, 0.5 }
 0x8e5   :  { %v1039_v42 = vmax.f32 %v1025_v39, 0.0  ;;  %v1720_v50 = vsel %vm1361_vm7, 1.0, %v3133_v60  ;;  %vm1624_vm7 = vcmask 0  }
 0x8e6   :  { %2008 = vmatprep.mubr.msk.f32.mxu1 %vm192_vm3, %v1035_v37  ;;  %v1594_v1 = vsel %vm1592_vm5, %v1720_v50, 0.0  ;;  %v2202_v2 = vpack.i.bf16 %v1720_v50, %v1719_v48  ;;  %v1602_v37 = vsel %vm1592_vm5, %v1724_v5, 0.0 }
 0x8e7   :  { %2009 = vmatmul.mubr.msk.f32.gmra.mrb[6].mxu1 %vm192_vm3, %v1036_v40  ;;  %v1595_v7 = vadd.f32 %v1594_v1, %v1593_v3 }
 0x8e8   :  { %2011 = vmatprep.mubr.msk.f32.mxu1 %vm192_vm3, %v1037_v38  ;;  %2203 = vperm.xlu0 %2201, %v2202_v2   ;;  %v1604_v38 = vsel %vm1592_vm5, %v1725_v57, 0.0 }
 0x8e9   :  { %v1597_v62 = vadd.f32 %v1596_v4, %v1595_v7 }
 0x8eb   :  { %2012 = vmatmul.mubr.msk.f32.gmra.mrb[8].mxu1 %vm192_vm3, %v1038_v43  ;;  %v1599_v49 = vadd.f32 %v1598_v61, %v1597_v62 }
 0x8ec   :  { %2014 = vmatprep.mubr.msk.f32.mxu1 %vm192_vm3, %v1039_v42  ;;  %1532 = vperm.xlu0 %2201, %v1721_v0  }
 0x8ed   :  { %v1601_v6 = vadd.f32 %v1600_v56, %v1599_v49 }
 0x8ef   :  { %2015 = vmatmul.mubr.msk.f32.gmra.mrb[10].mxu1 %vm192_vm3, %v1040_v45  ;;  %v1603_v39 = vadd.f32 %v1602_v37, %v1601_v6 }
 0x8f0   :  { %1547 = vperm.xlu0 %2201, %v1724_v5  }
 0x8f1   :  { %v1605_v40 = vadd.f32 %v1604_v38, %v1603_v39 }
 0x8f3   :  { %v1607_v42 = vadd.f32 %v1606_v41, %v1605_v40 }
 0x8f4   :  { %1557 = vperm.xlu0 %2201, %v1726_v63  }
 0x913   :  { %1608 = vadd.xlane.f32.xlu0 %v1607_v42 }
 0x9b6   :  { %v2007_v58 = vpop.f32.mrb[4].mxu1 }
 0x9b7   :  { %v1143_v9 = vadd.f32 %v2007_v58, %v2508_v25  ;;  %v1137_v10 = vpop.f32.mrb[5].mxu1 }
 0x9b8   :  { %v1138_v11 = vadd.f32 %v2508_v25, %v1137_v10 }
 0x9b9   :  { %v1177_v14 = vmax.f32 %v1143_v9, 0.0 }
 0x9ba   :  { %v1176_v12 = vmax.f32 %v1138_v11, 0.0  ;;  %v2010_v13 = vpop.f32.mrb[6].mxu1 }
 0x9bb   :  { %v1153_v15 = vadd.f32 %v2010_v13, %v2508_v25  ;;  %v1147_v16 = vpop.f32.mrb[7].mxu1 }
 0x9bc   :  { %v1148_v17 = vadd.f32 %v2508_v25, %v1147_v16  ;;  %2025 = vmatprep.mubr.msk.f32.mxu0 %vm192_vm3, %v1176_v12 }
 0x9bd   :  { %2026 = vmatmul.mubr.msk.f32.vlgmr.msra.gmra.mrb[4].mxu0 %vm192_vm3, %v1177_v14  ;;  %v1179_v20 = vmax.f32 %v1153_v15, 0.0  ;;  %v1345_v15 = vld [vmem:[%s3092_s1 + $0x8] sm:$0xff] }
 0x9be   :  { %v1178_v18 = vmax.f32 %v1148_v17, 0.0  ;;  %v2013_v19 = vpop.f32.mrb[8].mxu1  ;;  %v1344_v17 = vld [vmem:[%s3092_s1] sm:$0xff] }
 0x9bf   :  { %v1163_v21 = vadd.f32 %v2013_v19, %v2508_v25  ;;  %v1157_v31 = vpop.f32.mrb[9].mxu1 }
 0x9c0   :  { %v1158_v32 = vadd.f32 %v2508_v25, %v1157_v31  ;;  %2028 = vmatprep.mubr.msk.f32.mxu0 %vm192_vm3, %v1178_v18  ;;  %v1346_v31 = vld [vmem:[%s3092_s1 + $0x10] sm:$0xff] }
 0x9c1   :  { %2029 = vmatmul.mubr.msk.f32.gmra.mrb[6].mxu0 %vm192_vm3, %v1179_v20  ;;  %v1181_v22 = vmax.f32 %v1163_v21, 0.0 }
 0x9c2   :  { %v1180_v33 = vmax.f32 %v1158_v32, 0.0  ;;  %v2016_v34 = vpop.f32.mrb[10].mxu1  ;;  %v1347_v32 = vld [vmem:[%s3092_s1 + $0x18] sm:$0xff] }
 0x9c3   :  { %v1173_v23 = vadd.f32 %v2016_v34, %v2508_v25  ;;  %v1167_v35 = vpop.f32.mrb[11].mxu1 }
 0x9c4   :  { %v1168_v36 = vadd.f32 %v2508_v25, %v1167_v35  ;;  %2031 = vmatprep.mubr.msk.f32.mxu0 %vm192_vm3, %v1180_v33 }
 0x9c5   :  { %2032 = vmatmul.mubr.msk.f32.gmra.mrb[8].mxu0 %vm192_vm3, %v1181_v22  ;;  %v1183_v27 = vmax.f32 %v1173_v23, 0.0  ;;  %v1349_v23 = vld [vmem:[%s3092_s1 + $0x28] sm:$0xff] }
 0x9c6   :  { %v1182_v26 = vmax.f32 %v1168_v36, 0.0 }
 0x9c8   :  { %2034 = vmatprep.mubr.msk.f32.mxu0 %vm192_vm3, %v1182_v26 }
 0x9c9   :  { %2035 = vmatmul.mubr.msk.f32.gmra.mrb[10].mxu0 %vm192_vm3, %v1183_v27 }
 0xa90   :  { %v2027_v25 = vpop.f32.mrb[4].mxu0 }
 0xa91   :  { %v1286_v43 = vadd.f32 %v2027_v25, %v2533_v30  ;;  %v1280_v44 = vpop.f32.mrb[5].mxu0  ;;  %v1348_v25 = vld [vmem:[%s3092_s1 + $0x20] sm:$0xff] }
 0xa92   :  { %v1281_v45 = vadd.f32 %v2533_v30, %v1280_v44 }
 0xa93   :  { %v2855_v46 = vclamps-f32 %v1286_v43, 5.0  ;;  %v2956_v43 = vpop.permute.xlu0 %2203 }
 0xa94   :  { %v2857_v47 = vclamps-f32 %v1281_v45, 5.0  ;;  %v2030_v24 = vpop.f32.mrb[6].mxu0 }
 0xa95   :  { %1337 = vst.msk [vmem:[%s3106_s15 + $0x8] sm:$0xff] %vm1335_vm14, %v2855_v46  ;;  %v1409_v52 = vand.u32 2147483647, %v2855_v46  ;;  %v1296_v59 = vadd.f32 %v2030_v24, %v2533_v30  ;;  %v1290_v28 = vpop.f32.mrb[7].mxu0  ;;  %v1385_v20 = vmax.f32 %v2855_v46, 0.0  ;;  %v1393_v33 = vmul.f32 %v2855_v46, %v1345_v15 }
 0xa96   :  { %1336 = vst.msk [vmem:[%s3106_s15] sm:$0xff] %vm1335_vm14, %v2857_v47  ;;  %v1408_v29 = vand.u32 2147483647, %v2857_v47  ;;  %v1291_v60 = vadd.f32 %v2533_v30, %v1290_v28  ;;  %v1384_v34 = vmax.f32 %v2857_v47, 0.0  ;;  %v1392_v36 = vmul.f32 %v2857_v47, %v1344_v17 }
 0xa97   :  { %v1417_v48 = vsub.f32 0.0, %v1409_v52  ;;  %v2873_v50 = vclamps-f32 %v1296_v59, 5.0  ;;  %v2206_v47 = vunpack.i.h.bf16 %v2956_v43  ;;  %v2205_v24 = vunpack.i.l.bf16 %v2956_v43 }
 0xa98   :  { %v1416_v0 = vsub.f32 0.0, %v1408_v29  ;;  %v2875_v1 = vclamps-f32 %v1291_v60, 5.0  ;;  %v2033_v2 = vpop.f32.mrb[8].mxu0  ;;  %v2963_v52 = vsub.f32 %v1385_v20, %v1393_v33  ;;  %v2967_v28 = vsub.f32 %v1384_v34, %v1392_v36 }
 0xa99   :  { %v1426_v3 = vmul.f32 1.442695, %v1417_v48  ;;  %1339 = vst.msk [vmem:[%s3106_s15 + $0x18] sm:$0xff] %vm1335_vm14, %v2873_v50  ;;  %v1411_v4 = vand.u32 2147483647, %v2873_v50  ;;  %v1306_v7 = vadd.f32 %v2033_v2, %v2533_v30  ;;  %v1387_v37 = vmax.f32 %v2873_v50, 0.0 }
 0xa9a   :  { %v1300_v54 = vpop.f32.mrb[9].mxu0  ;;  %v1424_v55 = vmul.f32 1.442695, %v1416_v0  ;;  %1338 = vst.msk [vmem:[%s3106_s15 + $0x10] sm:$0xff] %vm1335_vm14, %v2875_v1  ;;  %v1386_v27 = vmax.f32 %v2875_v1, 0.0  ;;  %v1394_v41 = vmul.f32 %v2875_v1, %v1346_v31  ;;  %v1395_v42 = vmul.f32 %v2873_v50, %v1347_v32  ;;  %v1351_v48 = vld [vmem:[%s3092_s1 + $0x38] sm:$0xff] }
 0xa9b   :  { %v1410_v8 = vand.u32 2147483647, %v2875_v1  ;;  %v1301_v61 = vadd.f32 %v2533_v30, %v1300_v54  ;;  %2208 = vpow2.f32 %v1426_v3  ;;  %v1419_v62 = vsub.f32 0.0, %v1411_v4 }
 0xa9c   :  { %v2891_v53 = vclamps-f32 %v1306_v7, 5.0  ;;  %2210 = vpow2.f32 %v1424_v55  ;;  %v2036_v51 = vpop.f32.mrb[10].mxu0  ;;  %v2974_v0 = vsub.f32 %v1386_v27, %v1394_v41  ;;  %v2976_v1 = vsub.f32 %v1387_v37, %v1395_v42  ;;  %v1350_v55 = vld [vmem:[%s3092_s1 + $0x30] sm:$0xff] }
 0xa9d   :  { %v1418_v56 = vsub.f32 0.0, %v1410_v8  ;;  %v2893_v49 = vclamps-f32 %v1301_v61, 5.0  ;;  %v1430_v5 = vmul.f32 1.442695, %v1419_v62  ;;  %v1316_v57 = vadd.f32 %v2036_v51, %v2533_v30  ;;  %v1310_v63 = vpop.f32.mrb[11].mxu0 }
 0xa9e   :  { %1341 = vst.msk [vmem:[%s3106_s15 + $0x28] sm:$0xff] %vm1335_vm14, %v2891_v53  ;;  %v1413_v6 = vand.u32 2147483647, %v2891_v53  ;;  %v1311_v10 = vadd.f32 %v2533_v30, %v1310_v63  ;;  %v1389_v45 = vmax.f32 %v2891_v53, 0.0  ;;  %v1397_v46 = vmul.f32 %v2891_v53, %v1349_v23 }
 0xa9f   :  { %v1428_v58 = vmul.f32 1.442695, %v1418_v56  ;;  %1340 = vst.msk [vmem:[%s3106_s15 + $0x20] sm:$0xff] %vm1335_vm14, %v2893_v49  ;;  %v1412_v9 = vand.u32 2147483647, %v2893_v49  ;;  %2212 = vpow2.f32 %v1430_v5  ;;  %v2909_v12 = vclamps-f32 %v1316_v57, 5.0 }
 0xaa0   :  { %v1421_v11 = vsub.f32 0.0, %v1413_v6  ;;  %v2911_v14 = vclamps-f32 %v1311_v10, 5.0  ;;  %v1388_v29 = vmax.f32 %v2893_v49, 0.0  ;;  %v1396_v60 = vmul.f32 %v2893_v49, %v1348_v25 }
 0xaa1   :  { %2214 = vpow2.f32 %v1428_v58  ;;  %v1420_v13 = vsub.f32 0.0, %v1412_v9  ;;  %1343 = vst.msk [vmem:[%s3106_s15 + $0x38] sm:$0xff] %vm1335_vm14, %v2909_v12  ;;  %v1415_v30 = vand.u32 2147483647, %v2909_v12  ;;  %v2981_v54 = vsub.f32 %v1389_v45, %v1397_v46 }
 0xaa2   :  { %v1434_v16 = vmul.f32 1.442695, %v1421_v11  ;;  %1342 = vst.msk [vmem:[%s3106_s15 + $0x30] sm:$0xff] %vm1335_vm14, %v2911_v14  ;;  %v1414_v19 = vand.u32 2147483647, %v2911_v14  ;;  %v1391_v61 = vmax.f32 %v2909_v12, 0.0  ;;  %v1399_v62 = vmul.f32 %v2909_v12, %v1351_v48 }
 0xaa3   :  { %v1432_v18 = vmul.f32 1.442695, %v1420_v13  ;;  %v1423_v21 = vsub.f32 0.0, %v1415_v30  ;;  %v2991_v51 = vsub.f32 %v1388_v29, %v1396_v60  ;;  %v1390_v63 = vmax.f32 %v2911_v14, 0.0 }
 0xaa4   :  { %2216 = vpow2.f32 %v1434_v16  ;;  %v1422_v22 = vsub.f32 0.0, %v1414_v19  ;;  %v2995_v58 = vmul.f32 %v2911_v14, %v1350_v55  ;;  %v2997_v16 = vsub.f32 %v1391_v61, %v1399_v62 }
 0xaa5   :  { %2218 = vpow2.f32 %v1432_v18  ;;  %v2943_v35 = vpop.eup %2208  ;;  %v1438_v26 = vmul.f32 1.442695, %v1423_v21 }
 0xaa6   :  { %v2948_v38 = vpop.eup %2210  ;;  %v1436_v39 = vmul.f32 1.442695, %v1422_v22  ;;  %v1449_v40 = vadd.f32 1.0, %v2943_v35  ;;  %v1452_v4 = vmul.f32 -0.5, %v2943_v35  ;;  %v1455_v49 = vand.u32 2147483647, %v2943_v35 }
 0xaa7   :  { %2220 = vpow2.f32 %v1438_v26  ;;  %v1440_v44 = vadd.f32 1.0, %v2948_v38  ;;  %v1443_v3 = vmul.f32 -0.5, %v2948_v38  ;;  %v1446_v56 = vand.u32 2147483647, %v2948_v38 }
 0xaa8   :  { %2222 = vpow2.f32 %v1436_v39  ;;  %v1453_v10 = vadd.f32 1.0, %v1452_v4  ;;  %vm3005_vm0 = vcmp.lt.f32.partialorder %v1455_v49, 0.0004427343 }
 0xaa9   :  { %v2965_v59 = vpop.eup %2212  ;;  %2224 = vlog2.f32 %v1440_v44  ;;  %v1444_v9 = vadd.f32 1.0, %v1443_v3  ;;  %vm3001_vm15 = vcmp.lt.f32.partialorder %v1446_v56, 0.0004427343 }
 0xaaa   :  { %2226 = vlog2.f32 %v1449_v40  ;;  %v1467_v2 = vadd.f32 1.0, %v2965_v59  ;;  %v1470_v8 = vmul.f32 -0.5, %v2965_v59  ;;  %v1473_v31 = vand.u32 2147483647, %v2965_v59 }
 0xaab   :  { %v2215_v50 = vpop.eup %2214  ;;  %v1445_v22 = vmul.f32 %v2948_v38, %v1444_v9  ;;  %v1454_v23 = vmul.f32 %v2943_v35, %v1453_v10 }
 0xaac   :  { %v1458_v7 = vadd.f32 1.0, %v2215_v50  ;;  %2228 = vlog2.f32 %v1467_v2  ;;  %v1461_v6 = vmul.f32 -0.5, %v2215_v50  ;;  %v1464_v11 = vand.u32 2147483647, %v2215_v50 }
 0xaad   :  { %v1471_v13 = vadd.f32 1.0, %v1470_v8  ;;  %vm3023_vm2 = vcmp.lt.f32.partialorder %v1473_v31, 0.0004427343 }
 0xaae   :  { %v2217_v53 = vpop.eup %2216  ;;  %2230 = vlog2.f32 %v1458_v7  ;;  %v1462_v21 = vadd.f32 1.0, %v1461_v6  ;;  %vm3015_vm1 = vcmp.lt.f32.partialorder %v1464_v11, 0.0004427343  ;;  %v1538_v7 = vpop.permute.xlu1 %1537 }
 0xaaf   :  { %v2219_v5 = vpop.eup %2218  ;;  %v1485_v57 = vadd.f32 1.0, %v2217_v53  ;;  %v1488_v15 = vmul.f32 -0.5, %v2217_v53  ;;  %v1491_v32 = vand.u32 2147483647, %v2217_v53  ;;  %v1472_v39 = vmul.f32 %v2965_v59, %v1471_v13 }
 0xab0   :  { %v1476_v12 = vadd.f32 1.0, %v2219_v5  ;;  %v1479_v19 = vmul.f32 -0.5, %v2219_v5  ;;  %v1482_v25 = vand.u32 2147483647, %v2219_v5  ;;  %v1463_v38 = vmul.f32 %v2215_v50, %v1462_v21  ;;  %v1533_v50 = vpop.permute.xlu0 %1532 }
 0xab1   :  { %2232 = vlog2.f32 %v1485_v57  ;;  %v2999_v30 = vpop.eup %2220  ;;  %v1489_v40 = vadd.f32 1.0, %v1488_v15  ;;  %vm3027_vm3 = vcmp.lt.f32.partialorder %v1491_v32, 0.0004427343 }
 0xab2   :  { %2234 = vlog2.f32 %v1476_v12  ;;  %v3009_v20 = vpop.eup %2222  ;;  %v1503_v33 = vadd.f32 1.0, %v2999_v30  ;;  %v1480_v42 = vadd.f32 1.0, %v1479_v19  ;;  %v1506_v2 = vmul.f32 -0.5, %v2999_v30  ;;  %v1543_v32 = vpop.permute.xlu1 %1542 }
 0xab3   :  { %v2225_v34 = vpop.eup %2224  ;;  %v1494_v26 = vadd.f32 1.0, %v3009_v20  ;;  %v1490_v55 = vmul.f32 %v2217_v53, %v1489_v40  ;;  %v1497_v8 = vmul.f32 -0.5, %v3009_v20  ;;  %vm3041_vm4 = vcmp.lt.f32.partialorder %v1482_v25, 0.0004427343 }
 0xab4   :  { %v2227_v27 = vpop.eup %2226  ;;  %v1442_v37 = vmul.f32 0.6931472, %v2225_v34  ;;  %2236 = vlog2.f32 %v1503_v33  ;;  %v1481_v56 = vmul.f32 %v2219_v5, %v1480_v42  ;;  %v1509_v57 = vand.u32 2147483647, %v2999_v30  ;;  %v1548_v21 = vpop.permute.xlu0 %1547 }
 0xab5   :  { %v1451_v41 = vmul.f32 0.6931472, %v2227_v27  ;;  %2238 = vlog2.f32 %v1494_v26  ;;  %v1507_v11 = vadd.f32 1.0, %v1506_v2  ;;  %v1498_v15 = vadd.f32 1.0, %v1497_v8 }
 0xab6   :  { %v2229_v44 = vpop.eup %2228  ;;  %v1448_v35 = vsel %vm3001_vm15, %v1445_v22, %v1442_v37  ;;  %v1500_v43 = vand.u32 2147483647, %v3009_v20  ;;  %vm3060_vm5 = vcmp.lt.f32.partialorder %v1509_v57, 0.0004427343  ;;  %v1406_v34 = vsub.f32 %v1390_v63, %v2995_v58 }
 0xab7   :  { %v1457_v29 = vsel %vm3005_vm0, %v1454_v23, %v1451_v41  ;;  %v1512_v60 = vadd.f32 %v1448_v35, %v2967_v28  ;;  %v1469_v48 = vmul.f32 0.6931472, %v2229_v44 }
 0xab8   :  { %v2231_v59 = vpop.eup %2230  ;;  %v1513_v3 = vadd.f32 %v1457_v29, %v2963_v52  ;;  %vm1501_vm6 = vcmp.lt.f32.partialorder %v1500_v43, 0.0004427343  ;;  %v1558_v35 = vpop.permute.xlu0 %1557 }
 0xab9   :  { %v1460_v4 = vmul.f32 0.6931472, %v2231_v59  ;;  %v1560_v61 = vmul.f32 %v2205_v24, %v1512_v60  ;;  %v1475_v62 = vsel %vm3023_vm2, %v1472_v39, %v1469_v48  ;;  %v1499_v39 = vmul.f32 %v3009_v20, %v1498_v15 }
 0xaba   :  { %v1561_v52 = vmul.f32 %v2206_v47, %v1513_v3  ;;  %v1515_v6 = vadd.f32 %v1475_v62, %v2976_v1 }
 0xabb   :  { %v2233_v49 = vpop.eup %2232  ;;  %v1466_v53 = vsel %vm3015_vm1, %v1463_v38, %v1460_v4  ;;  %v1568_v9 = vsel %vm1335_vm14, %v1560_v61, 0.0  ;;  %v1553_v38 = vpop.permute.xlu1 %1552 }
 0xabc   :  { %v2235_v24 = vpop.eup %2234  ;;  %v1514_v5 = vadd.f32 %v1466_v53, %v2974_v0  ;;  %v1487_v10 = vmul.f32 0.6931472, %v2233_v49  ;;  %v1569_v12 = vsel %vm1335_vm14, %v1561_v52, 0.0  ;;  %v1563_v18 = vmul.f32 %v1538_v7, %v1515_v6 }
 0xabd   :  { %v1478_v13 = vmul.f32 0.6931472, %v2235_v24  ;;  %v1570_v17 = vadd.f32 %v1569_v12, %v1568_v9 }
 0xabe   :  { %v1562_v47 = vmul.f32 %v1533_v50, %v1514_v5  ;;  %v1493_v1 = vsel %vm3027_vm3, %v1490_v55, %v1487_v10  ;;  %v2237_v19 = vpop.eup %2236  ;;  %v1573_v40 = vsel %vm1335_vm14, %v1563_v18, 0.0 }
 0xabf   :  { %v1517_v31 = vadd.f32 %v1493_v1, %v2981_v54  ;;  %v1484_v0 = vsel %vm3041_vm4, %v1481_v56, %v1478_v13  ;;  %v2239_v22 = vpop.eup %2238  ;;  %v1505_v26 = vmul.f32 0.6931472, %v2237_v19  ;;  %v1508_v54 = vmul.f32 %v2999_v30, %v1507_v11 }
 0xac0   :  { %v1571_v23 = vsel %vm1335_vm14, %v1562_v47, 0.0  ;;  %v1516_v36 = vadd.f32 %v1484_v0, %v2991_v51  ;;  %v1496_v37 = vmul.f32 0.6931472, %v2239_v22 }
 0xac1   :  { %v1572_v27 = vadd.f32 %v1571_v23, %v1570_v17  ;;  %v1565_v41 = vmul.f32 %v1548_v21, %v1517_v31  ;;  %v1511_v14 = vsel %vm3060_vm5, %v1508_v54, %v1505_v26 }
 0xac2   :  { %v1564_v42 = vmul.f32 %v1543_v32, %v1516_v36  ;;  %v1519_v58 = vadd.f32 %v1511_v14, %v2997_v16  ;;  %v1502_v25 = vsel %vm1501_vm6, %v1499_v39, %v1496_v37  ;;  %v1609_v16 = vpop.xlane.xlu0 %1608 }
 0xac3   :  { %v1574_v63 = vadd.f32 %v1573_v40, %v1572_v27  ;;  %v1518_v44 = vadd.f32 %v1502_v25, %v1406_v34  ;;  %v1577_v20 = vsel %vm1335_vm14, %v1565_v41, 0.0  ;;  %v1610_v3 = vrot.slane %v1609_v16, 4 }
 0xac4   :  { %v1575_v51 = vsel %vm1335_vm14, %v1564_v42, 0.0  ;;  %v1567_v45 = vmul.f32 %v1558_v35, %v1519_v58 }
 0xac5   :  { %v1576_v30 = vadd.f32 %v1575_v51, %v1574_v63  ;;  %v1566_v46 = vmul.f32 %v1553_v38, %v1518_v44  ;;  %v1611_v50 = vadd.f32 %v1610_v3, %v1609_v16 }
 0xac6   :  { %v1581_v48 = vsel %vm1335_vm14, %v1567_v45, 0.0 }
 0xac7   :  { %v1578_v59 = vadd.f32 %v1577_v20, %v1576_v30  ;;  %v1579_v29 = vsel %vm1335_vm14, %v1566_v46, 0.0  ;;  %v1612_v4 = vrot.slane %v1611_v50, 2 }
 0xac9   :  { %v1580_v60 = vadd.f32 %v1579_v29, %v1578_v59  ;;  %v1613_v61 = vadd.f32 %v1612_v4, %v1611_v50 }
 0xacb   :  { %v1582_v2 = vadd.f32 %v1581_v48, %v1580_v60  ;;  %v1614_v28 = vrot.slane %v1613_v61, 1 }
 0xacd   :  { %1583 = vadd.xlane.f32.xlu1 %v1582_v2  ;;  %v1615_v53 = vadd.f32 %v1614_v28, %v1613_v61 }
 0xb5a   :  { %v1584_v7 = vpop.xlane.xlu1 %1583 }
 0xb5b   :  { %v1585_v55 = vrot.slane %v1584_v7, 4 }
 0xb5d   :  { %v1586_v8 = vadd.f32 %v1585_v55, %v1584_v7 }
 0xb5f   :  { %v1587_v62 = vrot.slane %v1586_v8, 2 }
 0xb61   :  { %v1588_v56 = vadd.f32 %v1587_v62, %v1586_v8 }
 0xb63   :  { %v1589_v49 = vrot.slane %v1588_v56, 1 }
 0xb65   :  { %v1590_v52 = vadd.f32 %v1589_v49, %v1588_v56 }
 0xb67   :  { %2149 = vpush %v1590_v52 }
 0xb68   :  { %2151 = vpush %v1615_v53 }
 0xb98   :  { %s2150_s1 = spop %2149 }
 0xb99   :  { %s2152_s21 = spop %2151 }
 0xb9a   :  { %s1617_s22 = smul.f32 2.0, %s2152_s21 }
 0xb9c   :  { %s1618_s4 = smax.f32 %s2296_s3, %s1617_s22 }
 0xb9d   :  { %v1619_v6 = vstv %s1618_s4 }
 0xb9e   :  { %2240 = vrcp.f32 %v1619_v6 }
 0xba8   :  { %v2241_v57 = vpop.eup %2240 }
 0xba9   :  { %2153 = vpush %v2241_v57 }
 0xbda   :  { %s2154_s9 = spop %2153 }
 0xbdb   :  { %s1622_s24 = smul.f32 %s2154_s9, %s2150_s1 }
 0xbdd   :  { %v1623_v24 = vstv %s1622_s24 }
 0xbde   :  { %1625 = vst.msk [vmem:[#allocation3] sm:$0x1] %vm1624_vm7, %v1623_v24 }
 0xbdf   :  { %2253 = shalt.err (!%p2250_p5)
}
 0xbe0   :  { %s2254_s26 = scalar_lea.hbm %s3107_s16, 16 }
 0xbe1   :  { %p2255_p6 = scmp.ne.s32.totalorder %s3107_s16, %s2254_s26  ;;  %p2258_p7 = scmp.lt.u32.totalorder %s2254_s26, %s3107_s16 }
 0xbe3   :  { %p2260_p8 = pnand %p2258_p7, %p2255_p6 }
 0xbe5   :  { %2263 = shalt.err (!%p2260_p8)
}
 0xbe6   :  { %1637 = dma.vmem_to_hbm [thread:$0]  %s1635_s23, 16, %s3107_s16, [#allocation4]  }
 0xbe7   :  { %2276 = dma.done.wait [#allocation4], 16  }
 0xbe8   :  { %2277 = vsyncadd [#allocation4], 4294967280 }
 0xbe9   :  { %1643 = vsyncpa [#allocation4], 1 }

</bundles_post_ra>
